<compile_context>
chip_gen: v7x
topology: tpu7x:2x2x1
jax: 0.10.0
libtpu: 0.0.40
codegen_flags: <defaults>
</compile_context>

<pallas_src>
import math
from dataclasses import dataclass
from functools import partial

import jax
import jax.numpy as jnp
from jax import lax
from jax.experimental import pallas as pl
from jax.experimental.pallas import tpu as pltpu


# ----------------------------- fused kernel ---------------------------------

def _layernorm(x, w, b, eps=1e-5):
    mu = jnp.mean(x, axis=-1, keepdims=True)
    var = jnp.mean((x - mu) ** 2, axis=-1, keepdims=True)
    return (x - mu) * lax.rsqrt(var + eps) * w + b


def _gelu(y):
    # TODO(synk): PyTorch nn.GELU() default is erf-exact; using the tanh
    # approximation (erf lowering in Mosaic is not guaranteed).
    c = math.sqrt(2.0 / math.pi)
    return 0.5 * y * (1.0 + jnp.tanh(c * (y + 0.044715 * y * y * y)))


def _genx_fused_kernel(
    x_ref,                                   # (B*T, C) f32 embedded tokens (+pos)
    ln1_w_ref, ln1_b_ref,                    # (1, 1, C) f32
    wqkv_ref, bqkv_ref,                      # (1, 3H, C, D) bf16 ; (1, 3H, 1, D) f32
    proj_w_ref, proj_b_ref,                  # (1, H, D, C) bf16 ; (1, 1, C) f32
    ln2_w_ref, ln2_b_ref,                    # (1, 1, C) f32
    fc_w_ref, fc_b_ref,                      # (1, C, 4C) bf16 ; (1, 1, 4C) f32
    mp_w_ref, mp_b_ref,                      # (1, 4C, C) bf16 ; (1, 1, C) f32
    lnf_w_ref, lnf_b_ref,                    # (1, C) f32
    wte_t_ref,                               # (C, V) bf16 (tied lm_head, pre-transposed)
    o_ref,                                   # (B*T, V) f32 logits
    x_scratch,                               # (B*T, C) f32 residual stream (VMEM)
    *, batch, n_head,
):
    layer = pl.program_id(0)
    n_layer = pl.num_programs(0)

    @pl.when(layer == 0)
    def _():
        x_scratch[...] = x_ref[...]

    x = x_scratch[...]                                    # (B*T, C) f32
    BT, C = x.shape
    B = batch
    T = BT // B
    H = n_head
    D = C // H

    # Causal mask shared by all heads / batch elements (diagonal unmasked).
    qi = lax.broadcasted_iota(jnp.int32, (T, T), 0)
    ki = lax.broadcasted_iota(jnp.int32, (T, T), 1)
    causal = (ki <= qi)[None, :, :]                       # (1, T, T)

    # ---------------- causal self-attention ----------------
    h1 = _layernorm(x, ln1_w_ref[0], ln1_b_ref[0]).astype(jnp.bfloat16)

    y2d = jnp.zeros((BT, C), jnp.float32)
    for hh in range(H):                                   # static unroll, H small
        # Head weights are pre-packed head-major in the wrapper; 1/sqrt(D) is
        # folded into the q weights & bias, so scores need no extra scale.
        q = jnp.dot(h1, wqkv_ref[0, hh, :, :],
                    preferred_element_type=jnp.float32) + bqkv_ref[0, hh]
        k = jnp.dot(h1, wqkv_ref[0, H + hh, :, :],
                    preferred_element_type=jnp.float32) + bqkv_ref[0, H + hh]
        v = jnp.dot(h1, wqkv_ref[0, 2 * H + hh, :, :],
                    preferred_element_type=jnp.float32) + bqkv_ref[0, 2 * H + hh]
        q3 = q.reshape(B, T, D)                           # sublane split: free
        k3 = k.reshape(B, T, D)
        v3 = v.reshape(B, T, D)

        s = jnp.einsum("bqd,bkd->bqk", q3, k3,
                       preferred_element_type=jnp.float32)        # (B, T, T) f32
        s = jnp.where(causal, s, -1e30)
        s = s - jnp.max(s, axis=-1, keepdims=True)
        p = jnp.exp(s)
        p = p / jnp.sum(p, axis=-1, keepdims=True)        # exact divide (tiny)
        o3 = jnp.einsum("bqk,bkd->bqd", p, v3,
                        preferred_element_type=jnp.float32)       # (B, T, D)

        # Fold this head straight back through its slice of the output
        # projection (no lane-offset concat of heads).
        o2 = o3.reshape(BT, D).astype(jnp.bfloat16)
        y2d = y2d + jnp.dot(o2, proj_w_ref[0, hh, :, :],
                            preferred_element_type=jnp.float32)
    y2d = y2d + proj_b_ref[0]
    x = x + y2d

    # ------------------------- MLP --------------------------
    h2 = _layernorm(x, ln2_w_ref[0], ln2_b_ref[0]).astype(jnp.bfloat16)
    f = jnp.dot(h2, fc_w_ref[0], preferred_element_type=jnp.float32) + fc_b_ref[0]
    f = _gelu(f).astype(jnp.bfloat16)
    m = jnp.dot(f, mp_w_ref[0], preferred_element_type=jnp.float32) + mp_b_ref[0]
    x = x + m
    x_scratch[...] = x

    # -------- final layernorm + tied lm_head (last layer only) --------
    @pl.when(layer == n_layer - 1)
    def _():
        xf = _layernorm(x, lnf_w_ref[...], lnf_b_ref[...]).astype(jnp.bfloat16)
        # (B*T, C) @ (C, V) — lane-dense RHS, lane-dense (B*T, 512) store.
        o_ref[...] = jnp.dot(xf, wte_t_ref[...],
                             preferred_element_type=jnp.float32)


def genx_fused(x_in, packed, lnf_w, lnf_b, wte_t, *, n_head, batch):
    """x_in: (B*T, C) f32 embedded tokens (pos emb already added).
    Returns logits (B*T, V) f32."""
    BT, C = x_in.shape
    L, threeH, _, D = packed["wqkv"].shape
    H = n_head
    V = wte_t.shape[1]

    cmapx = lambda l: (0, 0)
    cmap2 = lambda l: (0, 0)
    lmap3 = lambda l: (l, 0, 0)
    lmap4 = lambda l: (l, 0, 0, 0)

    in_specs = [
        pl.BlockSpec((BT, C), cmapx),                    # x (fetched once)
        pl.BlockSpec((1, 1, C), lmap3),                  # ln1_w
        pl.BlockSpec((1, 1, C), lmap3),                  # ln1_b
        pl.BlockSpec((1, 3 * H, C, D), lmap4),           # wqkv (head-major, bf16)
        pl.BlockSpec((1, 3 * H, 1, D), lmap4),           # bqkv
        pl.BlockSpec((1, H, D, C), lmap4),               # attn proj_w (bf16)
        pl.BlockSpec((1, 1, C), lmap3),                  # attn proj_b
        pl.BlockSpec((1, 1, C), lmap3),                  # ln2_w
        pl.BlockSpec((1, 1, C), lmap3),                  # ln2_b
        pl.BlockSpec((1, C, 4 * C), lmap3),              # fc_w (bf16)
        pl.BlockSpec((1, 1, 4 * C), lmap3),              # fc_b
        pl.BlockSpec((1, 4 * C, C), lmap3),              # mlp proj_w (bf16)
        pl.BlockSpec((1, 1, C), lmap3),                  # mlp proj_b
        pl.BlockSpec((1, C), cmap2),                     # lnf_w
        pl.BlockSpec((1, C), cmap2),                     # lnf_b
        pl.BlockSpec((C, V), cmap2),                     # wte^T (bf16, lane-dense)
    ]
    out_spec = pl.BlockSpec((BT, V), cmap2)

    return pl.pallas_call(
        partial(_genx_fused_kernel, batch=batch, n_head=n_head),
        out_shape=jax.ShapeDtypeStruct((BT, V), jnp.float32),
        grid_spec=pltpu.PrefetchScalarGridSpec(
            num_scalar_prefetch=0,
            grid=(L,),
            in_specs=in_specs,
            out_specs=out_spec,
            scratch_shapes=[pltpu.VMEM((BT, C), jnp.float32)]),
        compiler_params=pltpu.CompilerParams(
            dimension_semantics=("arbitrary",)),
    )(x_in,
      packed["ln1_w"], packed["ln1_b"], packed["wqkv"], packed["bqkv"],
      packed["proj_w"], packed["proj_b"], packed["ln2_w"], packed["ln2_b"],
      packed["fc_w"], packed["fc_b"], packed["mp_w"], packed["mp_b"],
      lnf_w, lnf_b, wte_t)


# ------------------------------ model (glue) --------------------------------

@dataclass(frozen=True)
class Config:
    vocab_size: int = 512
    block_size: int = 32
    n_layer: int = 2
    n_head: int = 4
    n_embd: int = 64
    im_embd: int = 48
    dropout: float = 0.0    # eval / p=0 -> dropout is identity
    bias: bool = True
    concat: bool = True


def init_params(cfg: Config, no_im_tokens: int, key):
    keys = iter(jax.random.split(key, 32))
    C, L = cfg.n_embd, cfg.n_layer

    def normal(shape, std=0.02):
        return jax.random.normal(next(keys), shape, jnp.float32) * std

    proj_std = 0.02 / math.sqrt(2 * cfg.n_layer)
    params = {
        "wte": normal((cfg.vocab_size, C)),                    # tied with lm_head
        "im_embed_w": normal((cfg.im_embd, C)),
        "im_embed_b": jnp.zeros((C,), jnp.float32),
        "im_embed2_w": normal((cfg.im_embd, no_im_tokens * C)),
        "im_embed2_b": jnp.zeros((no_im_tokens * C,), jnp.float32),
        "lnf_w": jnp.ones((1, C), jnp.float32),
        "lnf_b": jnp.zeros((1, C), jnp.float32),
        # Per-layer weights stacked along a leading n_layer axis (PyTorch
        # layout); re-packed for the fused kernel in _pack_blocks.
        "blocks": dict(
            ln1_w=jnp.ones((L, 1, C), jnp.float32),
            ln1_b=jnp.zeros((L, 1, C), jnp.float32),
            attn_w=normal((L, C, 3 * C)),
            attn_b=jnp.zeros((L, 1, 3 * C), jnp.float32),
            attn_proj_w=normal((L, C, C), proj_std),
            attn_proj_b=jnp.zeros((L, 1, C), jnp.float32),
            ln2_w=jnp.ones((L, 1, C), jnp.float32),
            ln2_b=jnp.zeros((L, 1, C), jnp.float32),
            fc_w=normal((L, C, 4 * C)),
            fc_b=jnp.zeros((L, 1, 4 * C), jnp.float32),
            mlp_proj_w=normal((L, 4 * C, C), proj_std),
            mlp_proj_b=jnp.zeros((L, 1, C), jnp.float32),
        ),
    }
    return params


def _pack_blocks(blocks, n_head):
    """Repack per-layer weights into the head-major / bf16 layout the fused
    kernel consumes (done once per forward; trivially cacheable)."""
    L, C, _ = blocks["attn_w"].shape
    H = n_head
    D = C // H
    scale = 1.0 / math.sqrt(D)

    aw = blocks["attn_w"]                                   # (L, C, 3C)
    wq, wk, wv = aw[:, :, :C], aw[:, :, C:2 * C], aw[:, :, 2 * C:]

    def to_heads(w):                                        # (L, C, C) -> (L, H, C, D)
        return w.reshape(L, C, H, D).transpose(0, 2, 1, 3)

    wq_h = to_heads(wq) * scale                             # fold 1/sqrt(D) into q
    wqkv = jnp.concatenate([wq_h, to_heads(wk), to_heads(wv)], axis=1)  # (L, 3H, C, D)

    ab = blocks["attn_b"].reshape(L, 3, H, D)               # (L, 1, 3C) -> (L, 3, H, D)
    bq = ab[:, 0] * scale
    bqkv = jnp.concatenate([bq, ab[:, 1], ab[:, 2]], axis=1).reshape(L, 3 * H, 1, D)

    proj_w = blocks["attn_proj_w"].reshape(L, H, D, C)      # rows are head-major

    return dict(
        ln1_w=blocks["ln1_w"], ln1_b=blocks["ln1_b"],
        wqkv=wqkv.astype(jnp.bfloat16), bqkv=bqkv,
        proj_w=proj_w.astype(jnp.bfloat16), proj_b=blocks["attn_proj_b"],
        ln2_w=blocks["ln2_w"], ln2_b=blocks["ln2_b"],
        fc_w=blocks["fc_w"].astype(jnp.bfloat16), fc_b=blocks["fc_b"],
        mp_w=blocks["mlp_proj_w"].astype(jnp.bfloat16), mp_b=blocks["mlp_proj_b"],
    )


def rope_additive_pos_emb(T, C):
    # RotaryPositionalEmbedding in the module is actually an *additive*
    # sinusoidal embedding (sin||cos of pos * inv_freq), added to tok_emb.
    # Depends only on static (T, C) so it is constant-folded under jit.
    pos = jnp.arange(T, dtype=jnp.float32)
    inv_freq = 1.0 / (10000.0 ** (jnp.arange(0, C, 2, dtype=jnp.float32) / C))
    sinusoids = pos[:, None] * inv_freq[None, :]
    emb = jnp.concatenate([jnp.sin(sinusoids), jnp.cos(sinusoids)], axis=-1)
    return emb[:, :C]


def genx_forward(params, cfg: Config, no_im_tokens: int, idx, im_feats, attn_mask=None):
    # Matches GenX.forward with targets=None (logits path).  attn_mask is
    # accepted but ignored, exactly like the module's flash (SDPA,
    # is_causal=True, attn_mask=None) branch.
    b, t = idx.shape
    C = cfg.n_embd

    tok_emb = params["wte"][idx]                               # (b, t, C) gather (XLA glue)

    if cfg.concat:
        if no_im_tokens == 1:
            im = im_feats @ params["im_embed_w"] + params["im_embed_b"]
            im = im[:, None, :]
        else:
            im = im_feats @ params["im_embed2_w"] + params["im_embed2_b"]
            im = im.reshape(b, no_im_tokens, C)
        tok_emb = jnp.concatenate([im, tok_emb], axis=1)
        T = t + no_im_tokens
    else:
        T = t

    pos = rope_additive_pos_emb(T, C)[None, :, :]              # (1, T, C)
    x_in = (tok_emb + pos).reshape(b * T, C)                   # fold pos emb + batch (XLA)

    packed = _pack_blocks(params["blocks"], cfg.n_head)
    wte_t = params["wte"].T.astype(jnp.bfloat16)               # (C, V) lane-dense lm_head

    logits2d = genx_fused(x_in, packed, params["lnf_w"], params["lnf_b"], wte_t,
                          n_head=cfg.n_head, batch=b)
    logits = logits2d.reshape(b, T, cfg.vocab_size)
    # TODO(synk): targets / cross-entropy-loss branch and generate() loop are
    # not implemented (inference logits path only); loss is None as in eval.
    return logits, None


# --------------------------------- demo -------------------------------------

if __name__ == "__main__":
    cfg = Config()
    no_im_tokens = 1

    key = jax.random.PRNGKey(0)
    pkey, ikey, fkey = jax.random.split(key, 3)

    params = init_params(cfg, no_im_tokens, pkey)

    B, t = 2, 15                                   # concat image token -> T = 16
    idx = jax.random.randint(ikey, (B, t), 0, cfg.vocab_size, dtype=jnp.int32)
    im_feats = jax.random.normal(fkey, (B, cfg.im_embd), jnp.float32)
    attn_mask = jnp.ones((B, t), jnp.int32)        # ignored by the flash/causal path

    fwd = jax.jit(lambda p, i, f: genx_forward(p, cfg, no_im_tokens, i, f, attn_mask))
    logits, loss = fwd(params, idx, im_feats)
    jax.block_until_ready(logits)

    assert logits.shape == (B, t + no_im_tokens, cfg.vocab_size)
    assert loss is None
    assert bool(jnp.all(jnp.isfinite(logits)))
    print("KERNEL_OK")
</pallas_src>

<mosaic_0001>
module attributes {stable_mosaic.version = 11 : i64} {
  func.func @_genx_fused_kernel(%arg0: i32, %arg1: memref<32x64xf32, #tpu.memory_space<vmem>>, %arg2: memref<1x1x64xf32, #tpu.memory_space<vmem>>, %arg3: memref<1x1x64xf32, #tpu.memory_space<vmem>>, %arg4: memref<1x12x64x16xbf16, #tpu.memory_space<vmem>>, %arg5: memref<1x12x1x16xf32, #tpu.memory_space<vmem>>, %arg6: memref<1x4x16x64xbf16, #tpu.memory_space<vmem>>, %arg7: memref<1x1x64xf32, #tpu.memory_space<vmem>>, %arg8: memref<1x1x64xf32, #tpu.memory_space<vmem>>, %arg9: memref<1x1x64xf32, #tpu.memory_space<vmem>>, %arg10: memref<1x64x256xbf16, #tpu.memory_space<vmem>>, %arg11: memref<1x1x256xf32, #tpu.memory_space<vmem>>, %arg12: memref<1x256x64xbf16, #tpu.memory_space<vmem>>, %arg13: memref<1x1x64xf32, #tpu.memory_space<vmem>>, %arg14: memref<1x64xf32, #tpu.memory_space<vmem>>, %arg15: memref<1x64xf32, #tpu.memory_space<vmem>>, %arg16: memref<64x512xbf16, #tpu.memory_space<vmem>>, %arg17: memref<32x512xf32, #tpu.memory_space<vmem>>, %arg18: memref<32x64xf32, #tpu.memory_space<vmem>>) attributes {dimension_semantics = [#tpu.dimension_semantics<arbitrary>], iteration_bounds = array<i64: 2>, scalar_prefetch = 0 : i64, scratch_operands = 1 : i64, tpu.core_type = #tpu.core_type<tc>, window_params = [{pipeline_mode = #tpu.pipeline_mode<synchronous>, transform_indices = @transform_0, window_bounds = array<i64: 32, 64>}, {transform_indices = @transform_1, window_bounds = array<i64: 1, 1, 64>}, {transform_indices = @transform_2, window_bounds = array<i64: 1, 1, 64>}, {transform_indices = @transform_3, window_bounds = array<i64: 1, 12, 64, 16>}, {transform_indices = @transform_4, window_bounds = array<i64: 1, 12, 1, 16>}, {transform_indices = @transform_5, window_bounds = array<i64: 1, 4, 16, 64>}, {transform_indices = @transform_6, window_bounds = array<i64: 1, 1, 64>}, {transform_indices = @transform_7, window_bounds = array<i64: 1, 1, 64>}, {transform_indices = @transform_8, window_bounds = array<i64: 1, 1, 64>}, {transform_indices = @transform_9, window_bounds = array<i64: 1, 64, 256>}, {transform_indices = @transform_10, window_bounds = array<i64: 1, 1, 256>}, {transform_indices = @transform_11, window_bounds = array<i64: 1, 256, 64>}, {transform_indices = @transform_12, window_bounds = array<i64: 1, 1, 64>}, {pipeline_mode = #tpu.pipeline_mode<synchronous>, transform_indices = @transform_13, window_bounds = array<i64: 1, 64>}, {pipeline_mode = #tpu.pipeline_mode<synchronous>, transform_indices = @transform_14, window_bounds = array<i64: 1, 64>}, {pipeline_mode = #tpu.pipeline_mode<synchronous>, transform_indices = @transform_15, window_bounds = array<i64: 64, 512>}, {pipeline_mode = #tpu.pipeline_mode<synchronous>, transform_indices = @transform_16, window_bounds = array<i64: 32, 512>}]} {
    %c0_i32 = arith.constant 0 : i32
    %0 = arith.cmpi eq, %arg0, %c0_i32 : i32
    %1 = arith.extui %0 : i1 to i32
    %c0_i32_0 = arith.constant 0 : i32
    %2 = arith.cmpi ne, %1, %c0_i32_0 : i32
    scf.if %2 {
      %c0_185 = arith.constant 0 : index
      %c0_186 = arith.constant 0 : index
      %281 = vector.load %arg1[%c0_185, %c0_186] : memref<32x64xf32, #tpu.memory_space<vmem>>, vector<32x64xf32>
      %c0_187 = arith.constant 0 : index
      %c0_188 = arith.constant 0 : index
      %282 = vector.load %arg18[%c0_187, %c0_188] : memref<32x64xf32, #tpu.memory_space<vmem>>, vector<32x64xf32>
      tpu.vector_store %arg18[%c0_187, %c0_188], %281 {strides = array<i32>} : memref<32x64xf32, #tpu.memory_space<vmem>>, vector<32x64xf32>,
    } else {
    }
    %c0 = arith.constant 0 : index
    %c0_1 = arith.constant 0 : index
    %3 = vector.load %arg18[%c0, %c0_1] : memref<32x64xf32, #tpu.memory_space<vmem>>, vector<32x64xf32>
    %4 = tpu.iota {dimensions = array<i32: 0>} : vector<16x16xi32>
    %5 = tpu.iota {dimensions = array<i32: 1>} : vector<16x16xi32>
    %6 = arith.cmpi sle, %5, %4 : vector<16x16xi32>
    %7 = vector.shape_cast %6 : vector<16x16xi1> to vector<1x16x16xi1>
    %c0_2 = arith.constant 0 : index
    %c0_3 = arith.constant 0 : index
    %c0_4 = arith.constant 0 : index
    %8 = vector.load %arg2[%c0_2, %c0_3, %c0_4] : memref<1x1x64xf32, #tpu.memory_space<vmem>>, vector<1x1x64xf32>
    %9 = vector.shape_cast %8 : vector<1x1x64xf32> to vector<1x64xf32>
    %c0_5 = arith.constant 0 : index
    %c0_6 = arith.constant 0 : index
    %c0_7 = arith.constant 0 : index
    %10 = vector.load %arg3[%c0_5, %c0_6, %c0_7] : memref<1x1x64xf32, #tpu.memory_space<vmem>>, vector<1x1x64xf32>
    %11 = vector.shape_cast %10 : vector<1x1x64xf32> to vector<1x64xf32>
    %cst = arith.constant dense<0.000000e+00> : vector<32xf32>
    %12 = vector.multi_reduction <add>, %3, %cst [1] : vector<32x64xf32> to vector<32xf32>
    %13 = vector.shape_cast %12 : vector<32xf32> to vector<32x1xf32>
    %cst_8 = arith.constant 6.400000e+01 : f32
    %14 = vector.broadcast %cst_8 : f32 to vector<32x1xf32>
    %15 = arith.divf %13, %14 : vector<32x1xf32>
    %16 = vector.broadcast %15 : vector<32x1xf32> to vector<32x64xf32>
    %17 = arith.subf %3, %16 : vector<32x64xf32>
    %18 = arith.mulf %17, %17 : vector<32x64xf32>
    %cst_9 = arith.constant dense<0.000000e+00> : vector<32xf32>
    %19 = vector.multi_reduction <add>, %18, %cst_9 [1] : vector<32x64xf32> to vector<32xf32>
    %20 = vector.shape_cast %19 : vector<32xf32> to vector<32x1xf32>
    %cst_10 = arith.constant 6.400000e+01 : f32
    %21 = vector.broadcast %cst_10 : f32 to vector<32x1xf32>
    %22 = arith.divf %20, %21 : vector<32x1xf32>
    %23 = vector.broadcast %15 : vector<32x1xf32> to vector<32x64xf32>
    %24 = arith.subf %3, %23 : vector<32x64xf32>
    %cst_11 = arith.constant 9.99999974E-6 : f32
    %25 = vector.broadcast %cst_11 : f32 to vector<32x1xf32>
    %26 = arith.addf %22, %25 : vector<32x1xf32>
    %27 = math.rsqrt %26 : vector<32x1xf32>
    %28 = vector.broadcast %27 : vector<32x1xf32> to vector<32x64xf32>
    %29 = arith.mulf %24, %28 : vector<32x64xf32>
    %30 = vector.broadcast %9 : vector<1x64xf32> to vector<32x64xf32>
    %31 = arith.mulf %29, %30 : vector<32x64xf32>
    %32 = vector.broadcast %11 : vector<1x64xf32> to vector<32x64xf32>
    %33 = arith.addf %31, %32 : vector<32x64xf32>
    %34 = arith.truncf %33 : vector<32x64xf32> to vector<32x64xbf16>
    %cst_12 = arith.constant 0.000000e+00 : f32
    %35 = vector.broadcast %cst_12 : f32 to vector<32x64xf32>
    %c0_13 = arith.constant 0 : index
    %c0_14 = arith.constant 0 : index
    %c0_15 = arith.constant 0 : index
    %c0_16 = arith.constant 0 : index
    %36 = vector.load %arg4[%c0_13, %c0_14, %c0_15, %c0_16] : memref<1x12x64x16xbf16, #tpu.memory_space<vmem>>, vector<1x1x64x16xbf16>
    %37 = vector.shape_cast %36 : vector<1x1x64x16xbf16> to vector<64x16xbf16>
    %cst_17 = arith.constant dense<0.000000e+00> : vector<32x16xf32>
    %38 = tpu.matmul %34, %37, %cst_17 {dimension_numbers = #tpu.dot_dimension_numbers<[1], [0], [0], [1], [0, 0, 1, 1], [], []>} : vector<32x64xbf16>, vector<64x16xbf16>, vector<32x16xf32> -> vector<32x16xf32>
    %c0_18 = arith.constant 0 : index
    %c0_19 = arith.constant 0 : index
    %c0_20 = arith.constant 0 : index
    %c0_21 = arith.constant 0 : index
    %39 = vector.load %arg5[%c0_18, %c0_19, %c0_20, %c0_21] : memref<1x12x1x16xf32, #tpu.memory_space<vmem>>, vector<1x1x1x16xf32>
    %40 = vector.shape_cast %39 : vector<1x1x1x16xf32> to vector<1x16xf32>
    %41 = vector.broadcast %40 : vector<1x16xf32> to vector<32x16xf32>
    %42 = arith.addf %38, %41 : vector<32x16xf32>
    %c0_22 = arith.constant 0 : index
    %c4 = arith.constant 4 : index
    %c0_23 = arith.constant 0 : index
    %c0_24 = arith.constant 0 : index
    %43 = vector.load %arg4[%c0_22, %c4, %c0_23, %c0_24] : memref<1x12x64x16xbf16, #tpu.memory_space<vmem>>, vector<1x1x64x16xbf16>
    %44 = vector.shape_cast %43 : vector<1x1x64x16xbf16> to vector<64x16xbf16>
    %cst_25 = arith.constant dense<0.000000e+00> : vector<32x16xf32>
    %45 = tpu.matmul %34, %44, %cst_25 {dimension_numbers = #tpu.dot_dimension_numbers<[1], [0], [0], [1], [0, 0, 1, 1], [], []>} : vector<32x64xbf16>, vector<64x16xbf16>, vector<32x16xf32> -> vector<32x16xf32>
    %c0_26 = arith.constant 0 : index
    %c4_27 = arith.constant 4 : index
    %c0_28 = arith.constant 0 : index
    %c0_29 = arith.constant 0 : index
    %46 = vector.load %arg5[%c0_26, %c4_27, %c0_28, %c0_29] : memref<1x12x1x16xf32, #tpu.memory_space<vmem>>, vector<1x1x1x16xf32>
    %47 = vector.shape_cast %46 : vector<1x1x1x16xf32> to vector<1x16xf32>
    %48 = vector.broadcast %47 : vector<1x16xf32> to vector<32x16xf32>
    %49 = arith.addf %45, %48 : vector<32x16xf32>
    %c0_30 = arith.constant 0 : index
    %c8 = arith.constant 8 : index
    %c0_31 = arith.constant 0 : index
    %c0_32 = arith.constant 0 : index
    %50 = vector.load %arg4[%c0_30, %c8, %c0_31, %c0_32] : memref<1x12x64x16xbf16, #tpu.memory_space<vmem>>, vector<1x1x64x16xbf16>
    %51 = vector.shape_cast %50 : vector<1x1x64x16xbf16> to vector<64x16xbf16>
    %cst_33 = arith.constant dense<0.000000e+00> : vector<32x16xf32>
    %52 = tpu.matmul %34, %51, %cst_33 {dimension_numbers = #tpu.dot_dimension_numbers<[1], [0], [0], [1], [0, 0, 1, 1], [], []>} : vector<32x64xbf16>, vector<64x16xbf16>, vector<32x16xf32> -> vector<32x16xf32>
    %c0_34 = arith.constant 0 : index
    %c8_35 = arith.constant 8 : index
    %c0_36 = arith.constant 0 : index
    %c0_37 = arith.constant 0 : index
    %53 = vector.load %arg5[%c0_34, %c8_35, %c0_36, %c0_37] : memref<1x12x1x16xf32, #tpu.memory_space<vmem>>, vector<1x1x1x16xf32>
    %54 = vector.shape_cast %53 : vector<1x1x1x16xf32> to vector<1x16xf32>
    %55 = vector.broadcast %54 : vector<1x16xf32> to vector<32x16xf32>
    %56 = arith.addf %52, %55 : vector<32x16xf32>
    %57 = vector.shape_cast %42 : vector<32x16xf32> to vector<2x16x16xf32>
    %58 = vector.shape_cast %49 : vector<32x16xf32> to vector<2x16x16xf32>
    %59 = vector.shape_cast %56 : vector<32x16xf32> to vector<2x16x16xf32>
    "tpu.trace_start"() <{level = 10 : i32, message = "bqd,bkd->bqk"}> : () -> ()
    %cst_38 = arith.constant dense<0.000000e+00> : vector<2x16x16xf32>
    %60 = tpu.matmul %57, %58, %cst_38 {dimension_numbers = #tpu.dot_dimension_numbers<[2], [2], [1], [1], [0, 0, 0, 1, 1, 1], [0], [0]>} : vector<2x16x16xf32>, vector<2x16x16xf32>, vector<2x16x16xf32> -> vector<2x16x16xf32>
    %cst_39 = arith.constant -1.000000e+30 : f32
    "tpu.trace_stop"() : () -> ()
    %61 = vector.shape_cast %7 : vector<1x16x16xi1> to vector<1x16x16xi1>
    %62 = vector.broadcast %61 : vector<1x16x16xi1> to vector<2x16x16xi1>
    %63 = vector.broadcast %cst_39 : f32 to vector<2x16x16xf32>
    %64 = arith.select %62, %60, %63 : vector<2x16x16xi1>, vector<2x16x16xf32>
    %cst_40 = arith.constant dense<0xFF800000> : vector<2x16xf32>
    %65 = vector.multi_reduction <maximumf>, %64, %cst_40 [2] : vector<2x16x16xf32> to vector<2x16xf32>
    %66 = vector.shape_cast %65 : vector<2x16xf32> to vector<2x16x1xf32>
    %67 = vector.broadcast %66 : vector<2x16x1xf32> to vector<2x16x16xf32>
    %68 = arith.subf %64, %67 : vector<2x16x16xf32>
    %69 = math.exp %68 : vector<2x16x16xf32>
    %cst_41 = arith.constant dense<0.000000e+00> : vector<2x16xf32>
    %70 = vector.multi_reduction <add>, %69, %cst_41 [2] : vector<2x16x16xf32> to vector<2x16xf32>
    %71 = vector.shape_cast %70 : vector<2x16xf32> to vector<2x16x1xf32>
    %72 = vector.broadcast %71 : vector<2x16x1xf32> to vector<2x16x16xf32>
    %73 = arith.divf %69, %72 : vector<2x16x16xf32>
    "tpu.trace_start"() <{level = 10 : i32, message = "bqk,bkd->bqd"}> : () -> ()
    %cst_42 = arith.constant dense<0.000000e+00> : vector<2x16x16xf32>
    %74 = tpu.matmul %73, %59, %cst_42 {dimension_numbers = #tpu.dot_dimension_numbers<[2], [1], [1], [2], [0, 0, 0, 1, 1, 2], [0], [0]>} : vector<2x16x16xf32>, vector<2x16x16xf32>, vector<2x16x16xf32> -> vector<2x16x16xf32>
    "tpu.trace_stop"() : () -> ()
    %75 = vector.shape_cast %74 : vector<2x16x16xf32> to vector<32x16xf32>
    %76 = arith.truncf %75 : vector<32x16xf32> to vector<32x16xbf16>
    %c0_43 = arith.constant 0 : index
    %c0_44 = arith.constant 0 : index
    %c0_45 = arith.constant 0 : index
    %c0_46 = arith.constant 0 : index
    %77 = vector.load %arg6[%c0_43, %c0_44, %c0_45, %c0_46] : memref<1x4x16x64xbf16, #tpu.memory_space<vmem>>, vector<1x1x16x64xbf16>
    %78 = vector.shape_cast %77 : vector<1x1x16x64xbf16> to vector<16x64xbf16>
    %cst_47 = arith.constant dense<0.000000e+00> : vector<32x64xf32>
    %79 = tpu.matmul %76, %78, %cst_47 {dimension_numbers = #tpu.dot_dimension_numbers<[1], [0], [0], [1], [0, 0, 1, 1], [], []>} : vector<32x16xbf16>, vector<16x64xbf16>, vector<32x64xf32> -> vector<32x64xf32>
    %80 = arith.addf %35, %79 : vector<32x64xf32>
    %c0_48 = arith.constant 0 : index
    %c1 = arith.constant 1 : index
    %c0_49 = arith.constant 0 : index
    %c0_50 = arith.constant 0 : index
    %81 = vector.load %arg4[%c0_48, %c1, %c0_49, %c0_50] : memref<1x12x64x16xbf16, #tpu.memory_space<vmem>>, vector<1x1x64x16xbf16>
    %82 = vector.shape_cast %81 : vector<1x1x64x16xbf16> to vector<64x16xbf16>
    %cst_51 = arith.constant dense<0.000000e+00> : vector<32x16xf32>
    %83 = tpu.matmul %34, %82, %cst_51 {dimension_numbers = #tpu.dot_dimension_numbers<[1], [0], [0], [1], [0, 0, 1, 1], [], []>} : vector<32x64xbf16>, vector<64x16xbf16>, vector<32x16xf32> -> vector<32x16xf32>
    %c0_52 = arith.constant 0 : index
    %c1_53 = arith.constant 1 : index
    %c0_54 = arith.constant 0 : index
    %c0_55 = arith.constant 0 : index
    %84 = vector.load %arg5[%c0_52, %c1_53, %c0_54, %c0_55] : memref<1x12x1x16xf32, #tpu.memory_space<vmem>>, vector<1x1x1x16xf32>
    %85 = vector.shape_cast %84 : vector<1x1x1x16xf32> to vector<1x16xf32>
    %86 = vector.broadcast %85 : vector<1x16xf32> to vector<32x16xf32>
    %87 = arith.addf %83, %86 : vector<32x16xf32>
    %c0_56 = arith.constant 0 : index
    %c5 = arith.constant 5 : index
    %c0_57 = arith.constant 0 : index
    %c0_58 = arith.constant 0 : index
    %88 = vector.load %arg4[%c0_56, %c5, %c0_57, %c0_58] : memref<1x12x64x16xbf16, #tpu.memory_space<vmem>>, vector<1x1x64x16xbf16>
    %89 = vector.shape_cast %88 : vector<1x1x64x16xbf16> to vector<64x16xbf16>
    %cst_59 = arith.constant dense<0.000000e+00> : vector<32x16xf32>
    %90 = tpu.matmul %34, %89, %cst_59 {dimension_numbers = #tpu.dot_dimension_numbers<[1], [0], [0], [1], [0, 0, 1, 1], [], []>} : vector<32x64xbf16>, vector<64x16xbf16>, vector<32x16xf32> -> vector<32x16xf32>
    %c0_60 = arith.constant 0 : index
    %c5_61 = arith.constant 5 : index
    %c0_62 = arith.constant 0 : index
    %c0_63 = arith.constant 0 : index
    %91 = vector.load %arg5[%c0_60, %c5_61, %c0_62, %c0_63] : memref<1x12x1x16xf32, #tpu.memory_space<vmem>>, vector<1x1x1x16xf32>
    %92 = vector.shape_cast %91 : vector<1x1x1x16xf32> to vector<1x16xf32>
    %93 = vector.broadcast %92 : vector<1x16xf32> to vector<32x16xf32>
    %94 = arith.addf %90, %93 : vector<32x16xf32>
    %c0_64 = arith.constant 0 : index
    %c9 = arith.constant 9 : index
    %c0_65 = arith.constant 0 : index
    %c0_66 = arith.constant 0 : index
    %95 = vector.load %arg4[%c0_64, %c9, %c0_65, %c0_66] : memref<1x12x64x16xbf16, #tpu.memory_space<vmem>>, vector<1x1x64x16xbf16>
    %96 = vector.shape_cast %95 : vector<1x1x64x16xbf16> to vector<64x16xbf16>
    %cst_67 = arith.constant dense<0.000000e+00> : vector<32x16xf32>
    %97 = tpu.matmul %34, %96, %cst_67 {dimension_numbers = #tpu.dot_dimension_numbers<[1], [0], [0], [1], [0, 0, 1, 1], [], []>} : vector<32x64xbf16>, vector<64x16xbf16>, vector<32x16xf32> -> vector<32x16xf32>
    %c0_68 = arith.constant 0 : index
    %c9_69 = arith.constant 9 : index
    %c0_70 = arith.constant 0 : index
    %c0_71 = arith.constant 0 : index
    %98 = vector.load %arg5[%c0_68, %c9_69, %c0_70, %c0_71] : memref<1x12x1x16xf32, #tpu.memory_space<vmem>>, vector<1x1x1x16xf32>
    %99 = vector.shape_cast %98 : vector<1x1x1x16xf32> to vector<1x16xf32>
    %100 = vector.broadcast %99 : vector<1x16xf32> to vector<32x16xf32>
    %101 = arith.addf %97, %100 : vector<32x16xf32>
    %102 = vector.shape_cast %87 : vector<32x16xf32> to vector<2x16x16xf32>
    %103 = vector.shape_cast %94 : vector<32x16xf32> to vector<2x16x16xf32>
    %104 = vector.shape_cast %101 : vector<32x16xf32> to vector<2x16x16xf32>
    "tpu.trace_start"() <{level = 10 : i32, message = "bqd,bkd->bqk"}> : () -> ()
    %cst_72 = arith.constant dense<0.000000e+00> : vector<2x16x16xf32>
    %105 = tpu.matmul %102, %103, %cst_72 {dimension_numbers = #tpu.dot_dimension_numbers<[2], [2], [1], [1], [0, 0, 0, 1, 1, 1], [0], [0]>} : vector<2x16x16xf32>, vector<2x16x16xf32>, vector<2x16x16xf32> -> vector<2x16x16xf32>
    %cst_73 = arith.constant -1.000000e+30 : f32
    "tpu.trace_stop"() : () -> ()
    %106 = vector.shape_cast %7 : vector<1x16x16xi1> to vector<1x16x16xi1>
    %107 = vector.broadcast %106 : vector<1x16x16xi1> to vector<2x16x16xi1>
    %108 = vector.broadcast %cst_73 : f32 to vector<2x16x16xf32>
    %109 = arith.select %107, %105, %108 : vector<2x16x16xi1>, vector<2x16x16xf32>
    %cst_74 = arith.constant dense<0xFF800000> : vector<2x16xf32>
    %110 = vector.multi_reduction <maximumf>, %109, %cst_74 [2] : vector<2x16x16xf32> to vector<2x16xf32>
    %111 = vector.shape_cast %110 : vector<2x16xf32> to vector<2x16x1xf32>
    %112 = vector.broadcast %111 : vector<2x16x1xf32> to vector<2x16x16xf32>
    %113 = arith.subf %109, %112 : vector<2x16x16xf32>
    %114 = math.exp %113 : vector<2x16x16xf32>
    %cst_75 = arith.constant dense<0.000000e+00> : vector<2x16xf32>
    %115 = vector.multi_reduction <add>, %114, %cst_75 [2] : vector<2x16x16xf32> to vector<2x16xf32>
    %116 = vector.shape_cast %115 : vector<2x16xf32> to vector<2x16x1xf32>
    %117 = vector.broadcast %116 : vector<2x16x1xf32> to vector<2x16x16xf32>
    %118 = arith.divf %114, %117 : vector<2x16x16xf32>
    "tpu.trace_start"() <{level = 10 : i32, message = "bqk,bkd->bqd"}> : () -> ()
    %cst_76 = arith.constant dense<0.000000e+00> : vector<2x16x16xf32>
    %119 = tpu.matmul %118, %104, %cst_76 {dimension_numbers = #tpu.dot_dimension_numbers<[2], [1], [1], [2], [0, 0, 0, 1, 1, 2], [0], [0]>} : vector<2x16x16xf32>, vector<2x16x16xf32>, vector<2x16x16xf32> -> vector<2x16x16xf32>
    "tpu.trace_stop"() : () -> ()
    %120 = vector.shape_cast %119 : vector<2x16x16xf32> to vector<32x16xf32>
    %121 = arith.truncf %120 : vector<32x16xf32> to vector<32x16xbf16>
    %c0_77 = arith.constant 0 : index
    %c1_78 = arith.constant 1 : index
    %c0_79 = arith.constant 0 : index
    %c0_80 = arith.constant 0 : index
    %122 = vector.load %arg6[%c0_77, %c1_78, %c0_79, %c0_80] : memref<1x4x16x64xbf16, #tpu.memory_space<vmem>>, vector<1x1x16x64xbf16>
    %123 = vector.shape_cast %122 : vector<1x1x16x64xbf16> to vector<16x64xbf16>
    %cst_81 = arith.constant dense<0.000000e+00> : vector<32x64xf32>
    %124 = tpu.matmul %121, %123, %cst_81 {dimension_numbers = #tpu.dot_dimension_numbers<[1], [0], [0], [1], [0, 0, 1, 1], [], []>} : vector<32x16xbf16>, vector<16x64xbf16>, vector<32x64xf32> -> vector<32x64xf32>
    %125 = arith.addf %80, %124 : vector<32x64xf32>
    %c0_82 = arith.constant 0 : index
    %c2 = arith.constant 2 : index
    %c0_83 = arith.constant 0 : index
    %c0_84 = arith.constant 0 : index
    %126 = vector.load %arg4[%c0_82, %c2, %c0_83, %c0_84] : memref<1x12x64x16xbf16, #tpu.memory_space<vmem>>, vector<1x1x64x16xbf16>
    %127 = vector.shape_cast %126 : vector<1x1x64x16xbf16> to vector<64x16xbf16>
    %cst_85 = arith.constant dense<0.000000e+00> : vector<32x16xf32>
    %128 = tpu.matmul %34, %127, %cst_85 {dimension_numbers = #tpu.dot_dimension_numbers<[1], [0], [0], [1], [0, 0, 1, 1], [], []>} : vector<32x64xbf16>, vector<64x16xbf16>, vector<32x16xf32> -> vector<32x16xf32>
    %c0_86 = arith.constant 0 : index
    %c2_87 = arith.constant 2 : index
    %c0_88 = arith.constant 0 : index
    %c0_89 = arith.constant 0 : index
    %129 = vector.load %arg5[%c0_86, %c2_87, %c0_88, %c0_89] : memref<1x12x1x16xf32, #tpu.memory_space<vmem>>, vector<1x1x1x16xf32>
    %130 = vector.shape_cast %129 : vector<1x1x1x16xf32> to vector<1x16xf32>
    %131 = vector.broadcast %130 : vector<1x16xf32> to vector<32x16xf32>
    %132 = arith.addf %128, %131 : vector<32x16xf32>
    %c0_90 = arith.constant 0 : index
    %c6 = arith.constant 6 : index
    %c0_91 = arith.constant 0 : index
    %c0_92 = arith.constant 0 : index
    %133 = vector.load %arg4[%c0_90, %c6, %c0_91, %c0_92] : memref<1x12x64x16xbf16, #tpu.memory_space<vmem>>, vector<1x1x64x16xbf16>
    %134 = vector.shape_cast %133 : vector<1x1x64x16xbf16> to vector<64x16xbf16>
    %cst_93 = arith.constant dense<0.000000e+00> : vector<32x16xf32>
    %135 = tpu.matmul %34, %134, %cst_93 {dimension_numbers = #tpu.dot_dimension_numbers<[1], [0], [0], [1], [0, 0, 1, 1], [], []>} : vector<32x64xbf16>, vector<64x16xbf16>, vector<32x16xf32> -> vector<32x16xf32>
    %c0_94 = arith.constant 0 : index
    %c6_95 = arith.constant 6 : index
    %c0_96 = arith.constant 0 : index
    %c0_97 = arith.constant 0 : index
    %136 = vector.load %arg5[%c0_94, %c6_95, %c0_96, %c0_97] : memref<1x12x1x16xf32, #tpu.memory_space<vmem>>, vector<1x1x1x16xf32>
    %137 = vector.shape_cast %136 : vector<1x1x1x16xf32> to vector<1x16xf32>
    %138 = vector.broadcast %137 : vector<1x16xf32> to vector<32x16xf32>
    %139 = arith.addf %135, %138 : vector<32x16xf32>
    %c0_98 = arith.constant 0 : index
    %c10 = arith.constant 10 : index
    %c0_99 = arith.constant 0 : index
    %c0_100 = arith.constant 0 : index
    %140 = vector.load %arg4[%c0_98, %c10, %c0_99, %c0_100] : memref<1x12x64x16xbf16, #tpu.memory_space<vmem>>, vector<1x1x64x16xbf16>
    %141 = vector.shape_cast %140 : vector<1x1x64x16xbf16> to vector<64x16xbf16>
    %cst_101 = arith.constant dense<0.000000e+00> : vector<32x16xf32>
    %142 = tpu.matmul %34, %141, %cst_101 {dimension_numbers = #tpu.dot_dimension_numbers<[1], [0], [0], [1], [0, 0, 1, 1], [], []>} : vector<32x64xbf16>, vector<64x16xbf16>, vector<32x16xf32> -> vector<32x16xf32>
    %c0_102 = arith.constant 0 : index
    %c10_103 = arith.constant 10 : index
    %c0_104 = arith.constant 0 : index
    %c0_105 = arith.constant 0 : index
    %143 = vector.load %arg5[%c0_102, %c10_103, %c0_104, %c0_105] : memref<1x12x1x16xf32, #tpu.memory_space<vmem>>, vector<1x1x1x16xf32>
    %144 = vector.shape_cast %143 : vector<1x1x1x16xf32> to vector<1x16xf32>
    %145 = vector.broadcast %144 : vector<1x16xf32> to vector<32x16xf32>
    %146 = arith.addf %142, %145 : vector<32x16xf32>
    %147 = vector.shape_cast %132 : vector<32x16xf32> to vector<2x16x16xf32>
    %148 = vector.shape_cast %139 : vector<32x16xf32> to vector<2x16x16xf32>
    %149 = vector.shape_cast %146 : vector<32x16xf32> to vector<2x16x16xf32>
    "tpu.trace_start"() <{level = 10 : i32, message = "bqd,bkd->bqk"}> : () -> ()
    %cst_106 = arith.constant dense<0.000000e+00> : vector<2x16x16xf32>
    %150 = tpu.matmul %147, %148, %cst_106 {dimension_numbers = #tpu.dot_dimension_numbers<[2], [2], [1], [1], [0, 0, 0, 1, 1, 1], [0], [0]>} : vector<2x16x16xf32>, vector<2x16x16xf32>, vector<2x16x16xf32> -> vector<2x16x16xf32>
    %cst_107 = arith.constant -1.000000e+30 : f32
    "tpu.trace_stop"() : () -> ()
    %151 = vector.shape_cast %7 : vector<1x16x16xi1> to vector<1x16x16xi1>
    %152 = vector.broadcast %151 : vector<1x16x16xi1> to vector<2x16x16xi1>
    %153 = vector.broadcast %cst_107 : f32 to vector<2x16x16xf32>
    %154 = arith.select %152, %150, %153 : vector<2x16x16xi1>, vector<2x16x16xf32>
    %cst_108 = arith.constant dense<0xFF800000> : vector<2x16xf32>
    %155 = vector.multi_reduction <maximumf>, %154, %cst_108 [2] : vector<2x16x16xf32> to vector<2x16xf32>
    %156 = vector.shape_cast %155 : vector<2x16xf32> to vector<2x16x1xf32>
    %157 = vector.broadcast %156 : vector<2x16x1xf32> to vector<2x16x16xf32>
    %158 = arith.subf %154, %157 : vector<2x16x16xf32>
    %159 = math.exp %158 : vector<2x16x16xf32>
    %cst_109 = arith.constant dense<0.000000e+00> : vector<2x16xf32>
    %160 = vector.multi_reduction <add>, %159, %cst_109 [2] : vector<2x16x16xf32> to vector<2x16xf32>
    %161 = vector.shape_cast %160 : vector<2x16xf32> to vector<2x16x1xf32>
    %162 = vector.broadcast %161 : vector<2x16x1xf32> to vector<2x16x16xf32>
    %163 = arith.divf %159, %162 : vector<2x16x16xf32>
    "tpu.trace_start"() <{level = 10 : i32, message = "bqk,bkd->bqd"}> : () -> ()
    %cst_110 = arith.constant dense<0.000000e+00> : vector<2x16x16xf32>
    %164 = tpu.matmul %163, %149, %cst_110 {dimension_numbers = #tpu.dot_dimension_numbers<[2], [1], [1], [2], [0, 0, 0, 1, 1, 2], [0], [0]>} : vector<2x16x16xf32>, vector<2x16x16xf32>, vector<2x16x16xf32> -> vector<2x16x16xf32>
    "tpu.trace_stop"() : () -> ()
    %165 = vector.shape_cast %164 : vector<2x16x16xf32> to vector<32x16xf32>
    %166 = arith.truncf %165 : vector<32x16xf32> to vector<32x16xbf16>
    %c0_111 = arith.constant 0 : index
    %c2_112 = arith.constant 2 : index
    %c0_113 = arith.constant 0 : index
    %c0_114 = arith.constant 0 : index
    %167 = vector.load %arg6[%c0_111, %c2_112, %c0_113, %c0_114] : memref<1x4x16x64xbf16, #tpu.memory_space<vmem>>, vector<1x1x16x64xbf16>
    %168 = vector.shape_cast %167 : vector<1x1x16x64xbf16> to vector<16x64xbf16>
    %cst_115 = arith.constant dense<0.000000e+00> : vector<32x64xf32>
    %169 = tpu.matmul %166, %168, %cst_115 {dimension_numbers = #tpu.dot_dimension_numbers<[1], [0], [0], [1], [0, 0, 1, 1], [], []>} : vector<32x16xbf16>, vector<16x64xbf16>, vector<32x64xf32> -> vector<32x64xf32>
    %170 = arith.addf %125, %169 : vector<32x64xf32>
    %c0_116 = arith.constant 0 : index
    %c3 = arith.constant 3 : index
    %c0_117 = arith.constant 0 : index
    %c0_118 = arith.constant 0 : index
    %171 = vector.load %arg4[%c0_116, %c3, %c0_117, %c0_118] : memref<1x12x64x16xbf16, #tpu.memory_space<vmem>>, vector<1x1x64x16xbf16>
    %172 = vector.shape_cast %171 : vector<1x1x64x16xbf16> to vector<64x16xbf16>
    %cst_119 = arith.constant dense<0.000000e+00> : vector<32x16xf32>
    %173 = tpu.matmul %34, %172, %cst_119 {dimension_numbers = #tpu.dot_dimension_numbers<[1], [0], [0], [1], [0, 0, 1, 1], [], []>} : vector<32x64xbf16>, vector<64x16xbf16>, vector<32x16xf32> -> vector<32x16xf32>
    %c0_120 = arith.constant 0 : index
    %c3_121 = arith.constant 3 : index
    %c0_122 = arith.constant 0 : index
    %c0_123 = arith.constant 0 : index
    %174 = vector.load %arg5[%c0_120, %c3_121, %c0_122, %c0_123] : memref<1x12x1x16xf32, #tpu.memory_space<vmem>>, vector<1x1x1x16xf32>
    %175 = vector.shape_cast %174 : vector<1x1x1x16xf32> to vector<1x16xf32>
    %176 = vector.broadcast %175 : vector<1x16xf32> to vector<32x16xf32>
    %177 = arith.addf %173, %176 : vector<32x16xf32>
    %c0_124 = arith.constant 0 : index
    %c7 = arith.constant 7 : index
    %c0_125 = arith.constant 0 : index
    %c0_126 = arith.constant 0 : index
    %178 = vector.load %arg4[%c0_124, %c7, %c0_125, %c0_126] : memref<1x12x64x16xbf16, #tpu.memory_space<vmem>>, vector<1x1x64x16xbf16>
    %179 = vector.shape_cast %178 : vector<1x1x64x16xbf16> to vector<64x16xbf16>
    %cst_127 = arith.constant dense<0.000000e+00> : vector<32x16xf32>
    %180 = tpu.matmul %34, %179, %cst_127 {dimension_numbers = #tpu.dot_dimension_numbers<[1], [0], [0], [1], [0, 0, 1, 1], [], []>} : vector<32x64xbf16>, vector<64x16xbf16>, vector<32x16xf32> -> vector<32x16xf32>
    %c0_128 = arith.constant 0 : index
    %c7_129 = arith.constant 7 : index
    %c0_130 = arith.constant 0 : index
    %c0_131 = arith.constant 0 : index
    %181 = vector.load %arg5[%c0_128, %c7_129, %c0_130, %c0_131] : memref<1x12x1x16xf32, #tpu.memory_space<vmem>>, vector<1x1x1x16xf32>
    %182 = vector.shape_cast %181 : vector<1x1x1x16xf32> to vector<1x16xf32>
    %183 = vector.broadcast %182 : vector<1x16xf32> to vector<32x16xf32>
    %184 = arith.addf %180, %183 : vector<32x16xf32>
    %c0_132 = arith.constant 0 : index
    %c11 = arith.constant 11 : index
    %c0_133 = arith.constant 0 : index
    %c0_134 = arith.constant 0 : index
    %185 = vector.load %arg4[%c0_132, %c11, %c0_133, %c0_134] : memref<1x12x64x16xbf16, #tpu.memory_space<vmem>>, vector<1x1x64x16xbf16>
    %186 = vector.shape_cast %185 : vector<1x1x64x16xbf16> to vector<64x16xbf16>
    %cst_135 = arith.constant dense<0.000000e+00> : vector<32x16xf32>
    %187 = tpu.matmul %34, %186, %cst_135 {dimension_numbers = #tpu.dot_dimension_numbers<[1], [0], [0], [1], [0, 0, 1, 1], [], []>} : vector<32x64xbf16>, vector<64x16xbf16>, vector<32x16xf32> -> vector<32x16xf32>
    %c0_136 = arith.constant 0 : index
    %c11_137 = arith.constant 11 : index
    %c0_138 = arith.constant 0 : index
    %c0_139 = arith.constant 0 : index
    %188 = vector.load %arg5[%c0_136, %c11_137, %c0_138, %c0_139] : memref<1x12x1x16xf32, #tpu.memory_space<vmem>>, vector<1x1x1x16xf32>
    %189 = vector.shape_cast %188 : vector<1x1x1x16xf32> to vector<1x16xf32>
    %190 = vector.broadcast %189 : vector<1x16xf32> to vector<32x16xf32>
    %191 = arith.addf %187, %190 : vector<32x16xf32>
    %192 = vector.shape_cast %177 : vector<32x16xf32> to vector<2x16x16xf32>
    %193 = vector.shape_cast %184 : vector<32x16xf32> to vector<2x16x16xf32>
    %194 = vector.shape_cast %191 : vector<32x16xf32> to vector<2x16x16xf32>
    "tpu.trace_start"() <{level = 10 : i32, message = "bqd,bkd->bqk"}> : () -> ()
    %cst_140 = arith.constant dense<0.000000e+00> : vector<2x16x16xf32>
    %195 = tpu.matmul %192, %193, %cst_140 {dimension_numbers = #tpu.dot_dimension_numbers<[2], [2], [1], [1], [0, 0, 0, 1, 1, 1], [0], [0]>} : vector<2x16x16xf32>, vector<2x16x16xf32>, vector<2x16x16xf32> -> vector<2x16x16xf32>
    %cst_141 = arith.constant -1.000000e+30 : f32
    "tpu.trace_stop"() : () -> ()
    %196 = vector.shape_cast %7 : vector<1x16x16xi1> to vector<1x16x16xi1>
    %197 = vector.broadcast %196 : vector<1x16x16xi1> to vector<2x16x16xi1>
    %198 = vector.broadcast %cst_141 : f32 to vector<2x16x16xf32>
    %199 = arith.select %197, %195, %198 : vector<2x16x16xi1>, vector<2x16x16xf32>
    %cst_142 = arith.constant dense<0xFF800000> : vector<2x16xf32>
    %200 = vector.multi_reduction <maximumf>, %199, %cst_142 [2] : vector<2x16x16xf32> to vector<2x16xf32>
    %201 = vector.shape_cast %200 : vector<2x16xf32> to vector<2x16x1xf32>
    %202 = vector.broadcast %201 : vector<2x16x1xf32> to vector<2x16x16xf32>
    %203 = arith.subf %199, %202 : vector<2x16x16xf32>
    %204 = math.exp %203 : vector<2x16x16xf32>
    %cst_143 = arith.constant dense<0.000000e+00> : vector<2x16xf32>
    %205 = vector.multi_reduction <add>, %204, %cst_143 [2] : vector<2x16x16xf32> to vector<2x16xf32>
    %206 = vector.shape_cast %205 : vector<2x16xf32> to vector<2x16x1xf32>
    %207 = vector.broadcast %206 : vector<2x16x1xf32> to vector<2x16x16xf32>
    %208 = arith.divf %204, %207 : vector<2x16x16xf32>
    "tpu.trace_start"() <{level = 10 : i32, message = "bqk,bkd->bqd"}> : () -> ()
    %cst_144 = arith.constant dense<0.000000e+00> : vector<2x16x16xf32>
    %209 = tpu.matmul %208, %194, %cst_144 {dimension_numbers = #tpu.dot_dimension_numbers<[2], [1], [1], [2], [0, 0, 0, 1, 1, 2], [0], [0]>} : vector<2x16x16xf32>, vector<2x16x16xf32>, vector<2x16x16xf32> -> vector<2x16x16xf32>
    "tpu.trace_stop"() : () -> ()
    %210 = vector.shape_cast %209 : vector<2x16x16xf32> to vector<32x16xf32>
    %211 = arith.truncf %210 : vector<32x16xf32> to vector<32x16xbf16>
    %c0_145 = arith.constant 0 : index
    %c3_146 = arith.constant 3 : index
    %c0_147 = arith.constant 0 : index
    %c0_148 = arith.constant 0 : index
    %212 = vector.load %arg6[%c0_145, %c3_146, %c0_147, %c0_148] : memref<1x4x16x64xbf16, #tpu.memory_space<vmem>>, vector<1x1x16x64xbf16>
    %213 = vector.shape_cast %212 : vector<1x1x16x64xbf16> to vector<16x64xbf16>
    %cst_149 = arith.constant dense<0.000000e+00> : vector<32x64xf32>
    %214 = tpu.matmul %211, %213, %cst_149 {dimension_numbers = #tpu.dot_dimension_numbers<[1], [0], [0], [1], [0, 0, 1, 1], [], []>} : vector<32x16xbf16>, vector<16x64xbf16>, vector<32x64xf32> -> vector<32x64xf32>
    %215 = arith.addf %170, %214 : vector<32x64xf32>
    %c0_150 = arith.constant 0 : index
    %c0_151 = arith.constant 0 : index
    %c0_152 = arith.constant 0 : index
    %216 = vector.load %arg7[%c0_150, %c0_151, %c0_152] : memref<1x1x64xf32, #tpu.memory_space<vmem>>, vector<1x1x64xf32>
    %217 = vector.shape_cast %216 : vector<1x1x64xf32> to vector<1x64xf32>
    %218 = vector.broadcast %217 : vector<1x64xf32> to vector<32x64xf32>
    %219 = arith.addf %215, %218 : vector<32x64xf32>
    %220 = arith.addf %3, %219 : vector<32x64xf32>
    %c0_153 = arith.constant 0 : index
    %c0_154 = arith.constant 0 : index
    %c0_155 = arith.constant 0 : index
    %221 = vector.load %arg8[%c0_153, %c0_154, %c0_155] : memref<1x1x64xf32, #tpu.memory_space<vmem>>, vector<1x1x64xf32>
    %222 = vector.shape_cast %221 : vector<1x1x64xf32> to vector<1x64xf32>
    %c0_156 = arith.constant 0 : index
    %c0_157 = arith.constant 0 : index
    %c0_158 = arith.constant 0 : index
    %223 = vector.load %arg9[%c0_156, %c0_157, %c0_158] : memref<1x1x64xf32, #tpu.memory_space<vmem>>, vector<1x1x64xf32>
    %224 = vector.shape_cast %223 : vector<1x1x64xf32> to vector<1x64xf32>
    %cst_159 = arith.constant dense<0.000000e+00> : vector<32xf32>
    %225 = vector.multi_reduction <add>, %220, %cst_159 [1] : vector<32x64xf32> to vector<32xf32>
    %226 = vector.shape_cast %225 : vector<32xf32> to vector<32x1xf32>
    %cst_160 = arith.constant 6.400000e+01 : f32
    %227 = vector.broadcast %cst_160 : f32 to vector<32x1xf32>
    %228 = arith.divf %226, %227 : vector<32x1xf32>
    %229 = vector.broadcast %228 : vector<32x1xf32> to vector<32x64xf32>
    %230 = arith.subf %220, %229 : vector<32x64xf32>
    %231 = arith.mulf %230, %230 : vector<32x64xf32>
    %cst_161 = arith.constant dense<0.000000e+00> : vector<32xf32>
    %232 = vector.multi_reduction <add>, %231, %cst_161 [1] : vector<32x64xf32> to vector<32xf32>
    %233 = vector.shape_cast %232 : vector<32xf32> to vector<32x1xf32>
    %cst_162 = arith.constant 6.400000e+01 : f32
    %234 = vector.broadcast %cst_162 : f32 to vector<32x1xf32>
    %235 = arith.divf %233, %234 : vector<32x1xf32>
    %236 = vector.broadcast %228 : vector<32x1xf32> to vector<32x64xf32>
    %237 = arith.subf %220, %236 : vector<32x64xf32>
    %cst_163 = arith.constant 9.99999974E-6 : f32
    %238 = vector.broadcast %cst_163 : f32 to vector<32x1xf32>
    %239 = arith.addf %235, %238 : vector<32x1xf32>
    %240 = math.rsqrt %239 : vector<32x1xf32>
    %241 = vector.broadcast %240 : vector<32x1xf32> to vector<32x64xf32>
    %242 = arith.mulf %237, %241 : vector<32x64xf32>
    %243 = vector.broadcast %222 : vector<1x64xf32> to vector<32x64xf32>
    %244 = arith.mulf %242, %243 : vector<32x64xf32>
    %245 = vector.broadcast %224 : vector<1x64xf32> to vector<32x64xf32>
    %246 = arith.addf %244, %245 : vector<32x64xf32>
    %247 = arith.truncf %246 : vector<32x64xf32> to vector<32x64xbf16>
    %c0_164 = arith.constant 0 : index
    %c0_165 = arith.constant 0 : index
    %c0_166 = arith.constant 0 : index
    %248 = vector.load %arg10[%c0_164, %c0_165, %c0_166] : memref<1x64x256xbf16, #tpu.memory_space<vmem>>, vector<1x64x256xbf16>
    %249 = vector.shape_cast %248 : vector<1x64x256xbf16> to vector<64x256xbf16>
    %cst_167 = arith.constant dense<0.000000e+00> : vector<32x256xf32>
    %250 = tpu.matmul %247, %249, %cst_167 {dimension_numbers = #tpu.dot_dimension_numbers<[1], [0], [0], [1], [0, 0, 1, 1], [], []>} : vector<32x64xbf16>, vector<64x256xbf16>, vector<32x256xf32> -> vector<32x256xf32>
    %c0_168 = arith.constant 0 : index
    %c0_169 = arith.constant 0 : index
    %c0_170 = arith.constant 0 : index
    %251 = vector.load %arg11[%c0_168, %c0_169, %c0_170] : memref<1x1x256xf32, #tpu.memory_space<vmem>>, vector<1x1x256xf32>
    %252 = vector.shape_cast %251 : vector<1x1x256xf32> to vector<1x256xf32>
    %253 = vector.broadcast %252 : vector<1x256xf32> to vector<32x256xf32>
    %254 = arith.addf %250, %253 : vector<32x256xf32>
    %cst_171 = arith.constant 5.000000e-01 : f32
    %255 = vector.broadcast %cst_171 : f32 to vector<32x256xf32>
    %256 = arith.mulf %255, %254 : vector<32x256xf32>
    %cst_172 = arith.constant 4.471500e-02 : f32
    %257 = vector.broadcast %cst_172 : f32 to vector<32x256xf32>
    %258 = arith.mulf %257, %254 : vector<32x256xf32>
    %259 = arith.mulf %258, %254 : vector<32x256xf32>
    %260 = arith.mulf %259, %254 : vector<32x256xf32>
    %261 = arith.addf %254, %260 : vector<32x256xf32>
    %cst_173 = arith.constant 0.797884583 : f32
    %262 = vector.broadcast %cst_173 : f32 to vector<32x256xf32>
    %263 = arith.mulf %262, %261 : vector<32x256xf32>
    %264 = math.tanh %263 : vector<32x256xf32>
    %cst_174 = arith.constant 1.000000e+00 : f32
    %265 = vector.broadcast %cst_174 : f32 to vector<32x256xf32>
    %266 = arith.addf %265, %264 : vector<32x256xf32>
    %267 = arith.mulf %256, %266 : vector<32x256xf32>
    %268 = arith.truncf %267 : vector<32x256xf32> to vector<32x256xbf16>
    %c0_175 = arith.constant 0 : index
    %c0_176 = arith.constant 0 : index
    %c0_177 = arith.constant 0 : index
    %269 = vector.load %arg12[%c0_175, %c0_176, %c0_177] : memref<1x256x64xbf16, #tpu.memory_space<vmem>>, vector<1x256x64xbf16>
    %270 = vector.shape_cast %269 : vector<1x256x64xbf16> to vector<256x64xbf16>
    %cst_178 = arith.constant dense<0.000000e+00> : vector<32x64xf32>
    %271 = tpu.matmul %268, %270, %cst_178 {dimension_numbers = #tpu.dot_dimension_numbers<[1], [0], [0], [1], [0, 0, 1, 1], [], []>} : vector<32x256xbf16>, vector<256x64xbf16>, vector<32x64xf32> -> vector<32x64xf32>
    %c0_179 = arith.constant 0 : index
    %c0_180 = arith.constant 0 : index
    %c0_181 = arith.constant 0 : index
    %272 = vector.load %arg13[%c0_179, %c0_180, %c0_181] : memref<1x1x64xf32, #tpu.memory_space<vmem>>, vector<1x1x64xf32>
    %273 = vector.shape_cast %272 : vector<1x1x64xf32> to vector<1x64xf32>
    %274 = vector.broadcast %273 : vector<1x64xf32> to vector<32x64xf32>
    %275 = arith.addf %271, %274 : vector<32x64xf32>
    %276 = arith.addf %220, %275 : vector<32x64xf32>
    %c0_182 = arith.constant 0 : index
    %c0_183 = arith.constant 0 : index
    %277 = vector.load %arg18[%c0_182, %c0_183] : memref<32x64xf32, #tpu.memory_space<vmem>>, vector<32x64xf32>
    tpu.vector_store %arg18[%c0_182, %c0_183], %276 {strides = array<i32>} : memref<32x64xf32, #tpu.memory_space<vmem>>, vector<32x64xf32>,
    %c1_i32 = arith.constant 1 : i32
    %278 = arith.cmpi eq, %arg0, %c1_i32 : i32
    %279 = arith.extui %278 : i1 to i32
    %c0_i32_184 = arith.constant 0 : i32
    %280 = arith.cmpi ne, %279, %c0_i32_184 : i32
    scf.if %280 {
      %c0_185 = arith.constant 0 : index
      %c0_186 = arith.constant 0 : index
      %281 = vector.load %arg14[%c0_185, %c0_186] : memref<1x64xf32, #tpu.memory_space<vmem>>, vector<1x64xf32>
      %c0_187 = arith.constant 0 : index
      %c0_188 = arith.constant 0 : index
      %282 = vector.load %arg15[%c0_187, %c0_188] : memref<1x64xf32, #tpu.memory_space<vmem>>, vector<1x64xf32>
      %cst_189 = arith.constant dense<0.000000e+00> : vector<32xf32>
      %283 = vector.multi_reduction <add>, %276, %cst_189 [1] : vector<32x64xf32> to vector<32xf32>
      %284 = vector.shape_cast %283 : vector<32xf32> to vector<32x1xf32>
      %cst_190 = arith.constant 6.400000e+01 : f32
      %285 = vector.broadcast %cst_190 : f32 to vector<32x1xf32>
      %286 = arith.divf %284, %285 : vector<32x1xf32>
      %287 = vector.broadcast %286 : vector<32x1xf32> to vector<32x64xf32>
      %288 = arith.subf %276, %287 : vector<32x64xf32>
      %289 = arith.mulf %288, %288 : vector<32x64xf32>
      %cst_191 = arith.constant dense<0.000000e+00> : vector<32xf32>
      %290 = vector.multi_reduction <add>, %289, %cst_191 [1] : vector<32x64xf32> to vector<32xf32>
      %291 = vector.shape_cast %290 : vector<32xf32> to vector<32x1xf32>
      %cst_192 = arith.constant 6.400000e+01 : f32
      %292 = vector.broadcast %cst_192 : f32 to vector<32x1xf32>
      %293 = arith.divf %291, %292 : vector<32x1xf32>
      %294 = vector.broadcast %286 : vector<32x1xf32> to vector<32x64xf32>
      %295 = arith.subf %276, %294 : vector<32x64xf32>
      %cst_193 = arith.constant 9.99999974E-6 : f32
      %296 = vector.broadcast %cst_193 : f32 to vector<32x1xf32>
      %297 = arith.addf %293, %296 : vector<32x1xf32>
      %298 = math.rsqrt %297 : vector<32x1xf32>
      %299 = vector.broadcast %298 : vector<32x1xf32> to vector<32x64xf32>
      %300 = arith.mulf %295, %299 : vector<32x64xf32>
      %301 = vector.broadcast %281 : vector<1x64xf32> to vector<32x64xf32>
      %302 = arith.mulf %300, %301 : vector<32x64xf32>
      %303 = vector.broadcast %282 : vector<1x64xf32> to vector<32x64xf32>
      %304 = arith.addf %302, %303 : vector<32x64xf32>
      %305 = arith.truncf %304 : vector<32x64xf32> to vector<32x64xbf16>
      %c0_194 = arith.constant 0 : index
      %c0_195 = arith.constant 0 : index
      %306 = vector.load %arg16[%c0_194, %c0_195] : memref<64x512xbf16, #tpu.memory_space<vmem>>, vector<64x512xbf16>
      %cst_196 = arith.constant dense<0.000000e+00> : vector<32x512xf32>
      %307 = tpu.matmul %305, %306, %cst_196 {dimension_numbers = #tpu.dot_dimension_numbers<[1], [0], [0], [1], [0, 0, 1, 1], [], []>} : vector<32x64xbf16>, vector<64x512xbf16>, vector<32x512xf32> -> vector<32x512xf32>
      %c0_197 = arith.constant 0 : index
      %c0_198 = arith.constant 0 : index
      %308 = vector.load %arg17[%c0_197, %c0_198] : memref<32x512xf32, #tpu.memory_space<vmem>>, vector<32x512xf32>
      tpu.vector_store %arg17[%c0_197, %c0_198], %307 {strides = array<i32>} : memref<32x512xf32, #tpu.memory_space<vmem>>, vector<32x512xf32>,
    } else {
    }
    return
  }
  func.func @transform_0(%arg0: i32) -> (i32, i32) {
    %c0_i32 = arith.constant 0 : i32
    %c0_i32_0 = arith.constant 0 : i32
    %c0_i32_1 = arith.constant 0 : i32
    return %c0_i32, %c0_i32_0 : i32, i32
  }
  func.func @transform_1(%arg0: i32) -> (i32, i32, i32) {
    %c0_i32 = arith.constant 0 : i32
    %c0_i32_0 = arith.constant 0 : i32
    %c0_i32_1 = arith.constant 0 : i32
    return %arg0, %c0_i32, %c0_i32_0 : i32, i32, i32
  }
  func.func @transform_2(%arg0: i32) -> (i32, i32, i32) {
    %c0_i32 = arith.constant 0 : i32
    %c0_i32_0 = arith.constant 0 : i32
    %c0_i32_1 = arith.constant 0 : i32
    return %arg0, %c0_i32, %c0_i32_0 : i32, i32, i32
  }
  func.func @transform_3(%arg0: i32) -> (i32, i32, i32, i32) {
    %c0_i32 = arith.constant 0 : i32
    %c0_i32_0 = arith.constant 0 : i32
    %c0_i32_1 = arith.constant 0 : i32
    %c0_i32_2 = arith.constant 0 : i32
    return %arg0, %c0_i32, %c0_i32_0, %c0_i32_1 : i32, i32, i32, i32
  }
  func.func @transform_4(%arg0: i32) -> (i32, i32, i32, i32) {
    %c0_i32 = arith.constant 0 : i32
    %c0_i32_0 = arith.constant 0 : i32
    %c0_i32_1 = arith.constant 0 : i32
    %c0_i32_2 = arith.constant 0 : i32
    return %arg0, %c0_i32, %c0_i32_0, %c0_i32_1 : i32, i32, i32, i32
  }
  func.func @transform_5(%arg0: i32) -> (i32, i32, i32, i32) {
    %c0_i32 = arith.constant 0 : i32
    %c0_i32_0 = arith.constant 0 : i32
    %c0_i32_1 = arith.constant 0 : i32
    %c0_i32_2 = arith.constant 0 : i32
    return %arg0, %c0_i32, %c0_i32_0, %c0_i32_1 : i32, i32, i32, i32
  }
  func.func @transform_6(%arg0: i32) -> (i32, i32, i32) {
    %c0_i32 = arith.constant 0 : i32
    %c0_i32_0 = arith.constant 0 : i32
    %c0_i32_1 = arith.constant 0 : i32
    return %arg0, %c0_i32, %c0_i32_0 : i32, i32, i32
  }
  func.func @transform_7(%arg0: i32) -> (i32, i32, i32) {
    %c0_i32 = arith.constant 0 : i32
    %c0_i32_0 = arith.constant 0 : i32
    %c0_i32_1 = arith.constant 0 : i32
    return %arg0, %c0_i32, %c0_i32_0 : i32, i32, i32
  }
  func.func @transform_8(%arg0: i32) -> (i32, i32, i32) {
    %c0_i32 = arith.constant 0 : i32
    %c0_i32_0 = arith.constant 0 : i32
    %c0_i32_1 = arith.constant 0 : i32
    return %arg0, %c0_i32, %c0_i32_0 : i32, i32, i32
  }
  func.func @transform_9(%arg0: i32) -> (i32, i32, i32) {
    %c0_i32 = arith.constant 0 : i32
    %c0_i32_0 = arith.constant 0 : i32
    %c0_i32_1 = arith.constant 0 : i32
    return %arg0, %c0_i32, %c0_i32_0 : i32, i32, i32
  }
  func.func @transform_10(%arg0: i32) -> (i32, i32, i32) {
    %c0_i32 = arith.constant 0 : i32
    %c0_i32_0 = arith.constant 0 : i32
    %c0_i32_1 = arith.constant 0 : i32
    return %arg0, %c0_i32, %c0_i32_0 : i32, i32, i32
  }
  func.func @transform_11(%arg0: i32) -> (i32, i32, i32) {
    %c0_i32 = arith.constant 0 : i32
    %c0_i32_0 = arith.constant 0 : i32
    %c0_i32_1 = arith.constant 0 : i32
    return %arg0, %c0_i32, %c0_i32_0 : i32, i32, i32
  }
  func.func @transform_12(%arg0: i32) -> (i32, i32, i32) {
    %c0_i32 = arith.constant 0 : i32
    %c0_i32_0 = arith.constant 0 : i32
    %c0_i32_1 = arith.constant 0 : i32
    return %arg0, %c0_i32, %c0_i32_0 : i32, i32, i32
  }
  func.func @transform_13(%arg0: i32) -> (i32, i32) {
    %c0_i32 = arith.constant 0 : i32
    %c0_i32_0 = arith.constant 0 : i32
    %c0_i32_1 = arith.constant 0 : i32
    return %c0_i32, %c0_i32_0 : i32, i32
  }
  func.func @transform_14(%arg0: i32) -> (i32, i32) {
    %c0_i32 = arith.constant 0 : i32
    %c0_i32_0 = arith.constant 0 : i32
    %c0_i32_1 = arith.constant 0 : i32
    return %c0_i32, %c0_i32_0 : i32, i32
  }
  func.func @transform_15(%arg0: i32) -> (i32, i32) {
    %c0_i32 = arith.constant 0 : i32
    %c0_i32_0 = arith.constant 0 : i32
    %c0_i32_1 = arith.constant 0 : i32
    return %c0_i32, %c0_i32_0 : i32, i32
  }
  func.func @transform_16(%arg0: i32) -> (i32, i32) {
    %c0_i32 = arith.constant 0 : i32
    %c0_i32_0 = arith.constant 0 : i32
    %c0_i32_1 = arith.constant 0 : i32
    return %c0_i32, %c0_i32_0 : i32, i32
  }
}

</mosaic_0001>

<bundles_post_ra>
// kernel: _lambda_.1
= control target key start
LH: loop header
LB: loop body
LE: loop exit
PB: predicated region body
PF: predicated region fallthrough
CT: control target
= control target key end

     0   :  { %s6532_s0 = inlined_call_operand.vmem [shape: f32[32,64], index: 0, kind: input, shape index: {}]   ;;  %s6533_s1 = inlined_call_operand.vmem [shape: f32[2,1,64], index: 1, kind: input, shape index: {}]   ;;  %s6534_s2 = inlined_call_operand.vmem [shape: f32[2,1,64], index: 2, kind: input, shape index: {}]   ;;  %s6535_s3 = inlined_call_operand.vmem [shape: bf16[2,12,64,16], index: 3, kind: input, shape index: {}]   ;;  %s6536_s4 = inlined_call_operand.vmem [shape: f32[2,12,1,16], index: 4, kind: input, shape index: {}]   ;;  %s6537_s5 = inlined_call_operand.vmem [shape: bf16[2,4,16,64], index: 5, kind: input, shape index: {}]   ;;  %s6538_s6 = inlined_call_operand.vmem [shape: f32[2,1,64], index: 6, kind: input, shape index: {}]   ;;  %s6539_s7 = inlined_call_operand.vmem [shape: f32[2,1,64], index: 7, kind: input, shape index: {}]   ;;  %s6540_s8 = inlined_call_operand.vmem [shape: f32[2,1,64], index: 8, kind: input, shape index: {}]   ;;  %s6541_s9 = inlined_call_operand.vmem [shape: bf16[2,64,256], index: 9, kind: input, shape index: {}]   ;;  %s6542_s10 = inlined_call_operand.vmem [shape: f32[2,1,256], index: 10, kind: input, shape index: {}]   ;;  %s6543_s11 = inlined_call_operand.vmem [shape: bf16[2,256,64], index: 11, kind: input, shape index: {}]   ;;  %s6544_s12 = inlined_call_operand.vmem [shape: f32[2,1,64], index: 12, kind: input, shape index: {}]   ;;  %s6545_s13 = inlined_call_operand.vmem [shape: f32[1,64], index: 13, kind: input, shape index: {}]   ;;  %s6546_s14 = inlined_call_operand.vmem [shape: f32[1,64], index: 14, kind: input, shape index: {}]   ;;  %s6547_s15 = inlined_call_operand.vmem [shape: bf16[64,512], index: 15, kind: input, shape index: {}]   ;;  %s6548_s16 = inlined_call_operand.hbm [shape: f32[32,512], index: 16, kind: output, shape index: {}]  }
   0x1   :  { %6553 = sst [smem:[#allocation7_spill]] %s6532_s0 }
   0x2   :  { %6554 = sst [smem:[#allocation8_spill]] %s6535_s3 }
   0x3   :  { %6555 = sst [smem:[#allocation9_spill]] %s6537_s5 }
   0x4   :  { %6556 = sst [smem:[#allocation10_spill]] %s6545_s13 }
   0x5   :  { %6557 = sst [smem:[#allocation11_spill]] %s6546_s14 }
   0x6   :  { %6558 = sst [smem:[#allocation12_spill]] %s6547_s15 }
   0x7   :  { %6559 = sst [smem:[#allocation13_spill]] %s6548_s16 }
   0x8   :  { %21 = vsyncpa [#allocation4], 0  ;;  %s5862_s21 = smov 0  }
   0x9 LB: > { %6560 = sst [smem:[#allocation6_spill]] %s5770_s21  ;;  %s5868_s22 = sadd.s32 4294967295, %s5770_s21   ;;  %s5770_s21 = sphi %s5862_s21, %s27_s21  }
   0xa   : > { %p4632_p0 = scmp.ge.s32.totalorder %s5770_s21, 1  ;;  %p554_p1 = scmp.lt.s32.totalorder %s5770_s21, 3 }
   0xc   : > { %p555_p2 = pnand %p4632_p0, %p554_p1 }
   0xd   : > { %p640_p3 = scmp.lt.s32.totalorder (!%p555_p2), %s5868_s22, 1  ;;  %s6561_s5 = sld [smem:[#allocation9_spill]] (!%p555_p2) }
   0xe   : > { %558 = sbr.rel (%p555_p2) target bundleno = 5698 (0x1642), region = 84  ;;  %s6562_s3 = sld [smem:[#allocation8_spill]] (!%p555_p2) }
   0xf   : > { %p4641_p4 = scmp.ne.s32.totalorder (!%p555_p2), %s5868_s22, 0 }
  0x15   : > { %s5874_s23 = scalar_select %p640_p3, %s5868_s22, 1 }
  0x16   : > { %s6563_s25 = sld [smem:[#allocation7_spill]] (!%p4641_p4)  ;;  %vm695_vm0 = vcmask (!%p4641_p4), 523264  }
  0x17   : > { %s5501_s30 = smul.u32 384, %s5874_s23  ;;  %s4950_s0 = sshll.u32 %s5874_s23, 5 }
  0x18   : > { %s5502_s17 = smul.u32 12, %s5874_s23  ;;  %s5890_s20 = scalar_lea.vmem %s6561_s5, %s4950_s0 }
  0x19   : > { %s5895_s21 = scalar_lea.vmem %s6562_s3, %s5501_s30  ;;  %s665_s18 = scalar_lea.vmem %s6539_s7, %s5874_s23 }
  0x1a   : > { %s5904_s29 = scalar_lea.vmem %s6536_s4, %s5502_s17  ;;  %s4951_s24 = sshll.u32 %s5874_s23, 6 }
  0x1b   : > { %s5918_s3 = scalar_lea.vmem %s6541_s9, %s4951_s24  ;;  %s4638_s16 = sshll.u32 %s5874_s23, 1 }
  0x1c   : > { %s5924_s17 = scalar_lea.vmem %s6542_s10, %s4638_s16  ;;  %s4952_s27 = sshll.u32 %s5874_s23, 7  ;;  %v691_v0 = vld [vmem:[%s6563_s25] sm:$0xff] (!%p4641_p4)  ;;  %v692_v1 = vld [vmem:[%s6563_s25 + $0x8] sm:$0xff] (!%p4641_p4)  ;;  %v693_v2 = vld [vmem:[%s6563_s25 + $0x10] sm:$0xff] (!%p4641_p4) }
  0x1d   : > { %s5930_s15 = scalar_lea.vmem %s6543_s11, %s4952_s27  ;;  %s685_s5 = scalar_lea.vmem %s6544_s12, %s5874_s23  ;;  %696 = vst.msk [vmem:[#allocation2] sm:$0xff] (!%p4641_p4), %vm695_vm0, %v691_v0  ;;  %697 = vst.msk [vmem:[#allocation2 + $0x8] sm:$0xff] (!%p4641_p4), %vm695_vm0, %v692_v1  ;;  %v694_v3 = vld [vmem:[%s6563_s25 + $0x18] sm:$0xff] (!%p4641_p4) }
  0x1e   : > { %690 = sbr.rel (%p4641_p4) target bundleno = 37 (0x25), region = 88  ;;  %698 = vst.msk [vmem:[#allocation2 + $0x10] sm:$0xff] (!%p4641_p4), %vm695_vm0, %v693_v2  ;;  %699 = vst.msk [vmem:[#allocation2 + $0x18] sm:$0xff] (!%p4641_p4), %vm695_vm0, %v694_v3 }
  0x25 PF: > { %v700_v4 = vld [vmem:[#allocation2] sm:$0xff]  ;;  %vm713_vm1 = vcmask 523264   ;;  %v702_v5 = vld [vmem:[#allocation2 + $0x10] sm:$0xff]  ;;  %v701_v6 = vld [vmem:[#allocation2 + $0x8] sm:$0xff]  ;;  %s6564_s24 = scalar_lea.vmem %s6533_s1, %s5874_s23  ;;  %s6565_s16 = scalar_lea.vmem %s6534_s2, %s5874_s23  ;;  %vm1063_vm2 = vcmask 130048  }
  0x26   : > { %v714_v7 = vsel %vm713_vm1, %v700_v4, 0.0  ;;  %v720_v8 = vsel %vm713_vm1, %v702_v5, 0.0  ;;  %v717_v9 = vsel %vm713_vm1, %v701_v6, 0.0  ;;  %v703_v10 = vld [vmem:[#allocation2 + $0x18] sm:$0xff]  ;;  %v5522_v32 = vld [vmem:[%s5895_s21] sm:$0xff]   ;;  %v5524_v34 = vld [vmem:[%s5895_s21 + $0x8] sm:$0xff]   ;;  %s6572_s26 = scalar_lea.vmem %s6538_s6, %s5874_s23  ;;  %s6573_s13 = scalar_lea.vmem %s6540_s8, %s5874_s23 }
  0x27   : > { %715 = vadd.xlane.f32.xlu0 %v714_v7  ;;  %721 = vadd.xlane.f32.xlu1 %v720_v8  ;;  %v723_v11 = vsel %vm713_vm1, %v703_v10, 0.0  ;;  %v5523_v33 = vld [vmem:[%s5895_s21 + $0x100] sm:$0xff]   ;;  %v5525_v35 = vld [vmem:[%s5895_s21 + $0x108] sm:$0xff]   ;;  %v5526_v36 = vld [vmem:[%s5895_s21 + $0x10] sm:$0xff]   ;;  %p4923_p5 = scmp.ne.s32.totalorder %s5868_s22, 1 }
  0x28   : > { %5129 = vmatprep.subr.bf16.mxu1 %v5522_v32  ;;  %5153 = vmatprep.subr.bf16.mxu0 %v5523_v33  ;;  %v5527_v37 = vld [vmem:[%s5895_s21 + $0x110] sm:$0xff]   ;;  %v5528_v38 = vld [vmem:[%s5895_s21 + $0x18] sm:$0xff]   ;;  %v5530_v40 = vld [vmem:[%s5895_s21 + $0x80] sm:$0xff]   ;;  %s6576_s23 = sld [smem:[#allocation11_spill]] (!%p4923_p5) }
  0x29   : > { %5130 = vmatpush3.bf16.msra.mxu1 %v5522_v32  ;;  %5154 = vmatpush3.bf16.msra.mxu0 %v5523_v33  ;;  %v5529_v39 = vld [vmem:[%s5895_s21 + $0x118] sm:$0xff]   ;;  %v4642_v55 = vld [vmem:[%s6564_s24] ss:$0 sm:$0xff]  ;;  %vm6017_vm3 = vmpackc.low %vm1063_vm2, %vm1063_vm2 }
  0x2a   : > { %5131 = vmatprep.subr.bf16.mxu1 %v5524_v34  ;;  %5155 = vmatprep.subr.bf16.mxu0 %v5525_v35  ;;  %v4643_v60 = vld [vmem:[%s6565_s16] ss:$0 sm:$0xff] }
  0x2b   : > { %718 = vadd.xlane.f32.xlu0 %v717_v9  ;;  %724 = vadd.xlane.f32.xlu1 %v723_v11  ;;  %v5531_v9 = vld [vmem:[%s5895_s21 + $0x88] sm:$0xff]   ;;  %v5533_v11 = vld [vmem:[%s5895_s21 + $0x98] sm:$0xff]  }
  0x2d   : > { %5132 = vmatpush3.bf16.msra.mxu1 %v5524_v34  ;;  %5156 = vmatpush3.bf16.msra.mxu0 %v5525_v35 }
  0x2e   : > { %5133 = vmatprep.subr.bf16.mxu1 %v5526_v36  ;;  %5157 = vmatprep.subr.bf16.mxu0 %v5527_v37 }
  0x31   : > { %5134 = vmatpush3.bf16.msra.mxu1 %v5526_v36  ;;  %5158 = vmatpush3.bf16.msra.mxu0 %v5527_v37 }
  0x32   : > { %5135 = vmatprep.subr.bf16.mxu1 %v5528_v38  ;;  %5159 = vmatprep.subr.bf16.mxu0 %v5529_v39 }
  0x35   : > { %5136 = vmatpush3.bf16.msra.mxu1 %v5528_v38  ;;  %5160 = vmatpush3.bf16.msra.mxu0 %v5529_v39 }
  0x36   : > { %5141 = vmatprep.subr.bf16.mxu1 %v5530_v40 }
  0xb4   : > { %v716_v12 = vpop.xlane.xlu0 %715  ;;  %v722_v13 = vpop.xlane.xlu1 %721 }
  0xb5   : > { %v727_v14 = vmul.f32 0.015625, %v716_v12  ;;  %v729_v15 = vmul.f32 0.015625, %v722_v13  ;;  %v4644_v12 = vld [vmem:[%s5904_s29] ss:$0 sm:$0xff] }
  0xb7   : > { %v5953_v16 = vsub.f32 %v700_v4, %v727_v14  ;;  %v5955_v17 = vsub.f32 %v702_v5, %v729_v15  ;;  %v4676_v15 = vld [vmem:[%s5904_s29 + $0x8] ss:$0 sm:$0xff] }
  0xb8   : > { %v719_v18 = vpop.xlane.xlu0 %718  ;;  %v725_v19 = vpop.xlane.xlu1 %724 }
  0xb9   : > { %v728_v20 = vmul.f32 0.015625, %v719_v18  ;;  %v730_v21 = vmul.f32 0.015625, %v725_v19  ;;  %v735_v22 = vmul.f32 %v5953_v16, %v5953_v16  ;;  %v737_v23 = vmul.f32 %v5955_v17, %v5955_v17 }
  0xbb   : > { %v732_v24 = vsub.f32 %v701_v6, %v728_v20  ;;  %v5961_v25 = vsub.f32 %v703_v10, %v730_v21  ;;  %v739_v26 = vsel %vm713_vm1, %v735_v22, 0.0  ;;  %v745_v27 = vsel %vm713_vm1, %v737_v23, 0.0  ;;  %v5532_v10 = vld [vmem:[%s5895_s21 + $0x90] sm:$0xff]  }
  0xbc   : > { %740 = vadd.xlane.f32.xlu0 %v739_v26 }
  0xbd   : > { %v736_v28 = vmul.f32 %v732_v24, %v732_v24  ;;  %v738_v29 = vmul.f32 %v5961_v25, %v5961_v25 }
  0xbf   : > { %v742_v30 = vsel %vm713_vm1, %v736_v28, 0.0  ;;  %v748_v31 = vsel %vm713_vm1, %v738_v29, 0.0 }
  0xc0   : > { %746 = vadd.xlane.f32.xlu0 %v745_v27  ;;  %743 = vadd.xlane.f32.xlu1 %v742_v30 }
  0xc4   : > { %749 = vadd.xlane.f32.xlu1 %v748_v31  ;;  %v4660_v31 = vld [vmem:[%s5904_s29 + $0x4] ss:$0 sm:$0xff] }
 0x149   : > { %v741_v41 = vpop.xlane.xlu0 %740 }
 0x14a   : > { %v751_v42 = vmul.f32 0.015625, %v741_v41 }
 0x14c   : > { %v755_v43 = vadd.f32 1e-05, %v751_v42 }
 0x14d   : > { %v744_v44 = vpop.xlane.xlu1 %743  ;;  %v747_v45 = vpop.xlane.xlu0 %746 }
 0x14e   : > { %5602 = vrsqrt.f32 %v755_v43  ;;  %v752_v46 = vmul.f32 0.015625, %v744_v44  ;;  %v753_v47 = vmul.f32 0.015625, %v747_v45  ;;  %v704_v44 = vlaneseq }
 0x150   : > { %v756_v48 = vadd.f32 1e-05, %v752_v46  ;;  %v757_v49 = vadd.f32 1e-05, %v753_v47  ;;  %v6031_v45 = vshrl.u32 %v704_v44, 7  ;;  %v708_v47 = vand.u32 127, %v704_v44 }
 0x151   : > { %v750_v50 = vpop.xlane.xlu1 %749  ;;  %v5545_v44 = vld [vmem:[%s5895_s21 + $0x138] sm:$0xff]  }
 0x152   : > { %5604 = vrsqrt.f32 %v756_v48  ;;  %v754_v51 = vmul.f32 0.015625, %v750_v50  ;;  %v706_v46 = vadd.s32 8, %v6031_v45  ;;  %vm6039_vm5 = vcmp.le.s32.totalorder %v708_v47, %v6031_v45 }
 0x153   : > { %5606 = vrsqrt.f32 %v757_v49 }
 0x154   : > { %v758_v52 = vadd.f32 1e-05, %v754_v51  ;;  %vm6034_vm4 = vcmp.le.s32.totalorder %v708_v47, %v706_v46 }
 0x156   : > { %5608 = vrsqrt.f32 %v758_v52 }
 0x158   : > { %v5603_v53 = vpop.eup %5602 }
 0x159   : > { %v763_v54 = vmul.f32 %v5603_v53, %v5953_v16 }
 0x15b   : > { %v773_v58 = vmul.f32 %v4642_v55, %v763_v54 }
 0x15c   : > { %v5605_v56 = vpop.eup %5604 }
 0x15d   : > { %v5607_v57 = vpop.eup %5606  ;;  %v764_v59 = vmul.f32 %v5605_v56, %v732_v24  ;;  %v783_v0 = vadd.f32 %v4643_v60, %v773_v58 }
 0x15e   : > { %v765_v61 = vmul.f32 %v5607_v57, %v5955_v17 }
 0x15f   : > { %v774_v62 = vmul.f32 %v4642_v55, %v764_v59 }
 0x160   : > { %v5609_v63 = vpop.eup %5608  ;;  %v775_v2 = vmul.f32 %v4642_v55, %v765_v61 }
 0x161   : > { %v784_v1 = vadd.f32 %v4643_v60, %v774_v62  ;;  %v766_v3 = vmul.f32 %v5609_v63, %v5961_v25 }
 0x162   : > { %v785_v6 = vadd.f32 %v4643_v60, %v775_v2 }
 0x163   : > { %v5991_v4 = vpack.c.bf16 %v784_v1, %v783_v0  ;;  %v776_v5 = vmul.f32 %v4642_v55, %v766_v3 }
 0x165   : > { %v786_v7 = vadd.f32 %v4643_v60, %v776_v5  ;;  %5137 = vmatprep.mubr.msk.bf16.mxu1 %vm713_vm1, %v5991_v4  ;;  %5161 = vmatprep.mubr.msk.bf16.mxu0 %vm713_vm1, %v5991_v4 }
 0x167   : > { %v5997_v8 = vpack.c.bf16 %v786_v7, %v785_v6 }
 0x169   : > { %5138 = vmatmul.mubr.msk.bf16.vlgmr.msra.gmra.mrb[0].mxu1 %vm713_vm1, %v5997_v8  ;;  %5162 = vmatmul.mubr.msk.bf16.vlgmr.msra.gmra.mrb[0].mxu0 %vm713_vm1, %v5997_v8 }
 0x16a   : > { %5142 = vmatpush3.bf16.msra.mxu1 %v5530_v40  ;;  %5149 = vmatprep.mubr.msk.bf16.mxu1 %vm713_vm1, %v5991_v4 }
 0x16b   : > { %5143 = vmatprep.subr.bf16.mxu1 %v5531_v9 }
 0x16e   : > { %5144 = vmatpush3.bf16.msra.mxu1 %v5531_v9 }
 0x16f   : > { %5145 = vmatprep.subr.bf16.mxu1 %v5532_v10 }
 0x172   : > { %5146 = vmatpush3.bf16.msra.mxu1 %v5532_v10 }
 0x173   : > { %5147 = vmatprep.subr.bf16.mxu1 %v5533_v11 }
 0x176   : > { %5148 = vmatpush3.bf16.msra.mxu1 %v5533_v11 }
 0x179   : > { %5150 = vmatmul.mubr.msk.bf16.vlgmr.msra.gmra.mrb[4].mxu1 %vm713_vm1, %v5997_v8 }
 0x23c   : > { %v5139_v13 = vpop.f32.mrb[0].mxu1  ;;  %v5163_v14 = vpop.f32.mrb[0].mxu0 }
 0x23d   : > { %v877_v16 = vadd.f32 %v5139_v13, %v4644_v12  ;;  %v868_v17 = vpop.f32.mrb[1].mxu1  ;;  %v1048_v18 = vpop.f32.mrb[1].mxu0  ;;  %v1057_v22 = vadd.f32 %v5163_v14, %v4676_v15 }
 0x23e   : > { %v869_v19 = vadd.f32 %v4644_v12, %v868_v17  ;;  %v5140_v20 = vpop.f32.mrb[2].mxu1  ;;  %v5164_v21 = vpop.f32.mrb[2].mxu0  ;;  %v1049_v26 = vadd.f32 %v4676_v15, %v1048_v18 }
 0x23f   : > { %v1060_v23 = vadd.f32 %v5164_v21, %v4676_v15  ;;  %v871_v24 = vpop.f32.mrb[3].mxu1  ;;  %v1051_v25 = vpop.f32.mrb[3].mxu0  ;;  %5176 = vmatprep.mubr.msk.f32.mxu1 %vm1063_vm2, %v877_v16  ;;  %v880_v42 = vadd.f32 %v5140_v20, %v4644_v12  ;;  %v5534_v20 = vld [vmem:[%s5895_s21 + $0xa0] sm:$0xff]  }
 0x240   : > { %v1052_v27 = vadd.f32 %v4676_v15, %v1051_v25  ;;  %5169 = vmatprep.mubr.msk.f32.mxu0 %vm1063_vm2, %v869_v19  ;;  %v872_v43 = vadd.f32 %v4644_v12, %v871_v24  ;;  %v5535_v21 = vld [vmem:[%s5895_s21 + $0x20] sm:$0xff]  }
 0x241   : > { %v5425_v28 = vpack.c.bf16 %v1060_v23, %v1057_v22 }
 0x242   : > { %v5421_v29 = vpack.c.bf16 %v1052_v27, %v1049_v26 }
 0x24c   : > { %v5151_v30 = vpop.f32.mrb[4].mxu1 }
 0x24d   : > { %v958_v32 = vpop.f32.mrb[5].mxu1  ;;  %v967_v34 = vadd.f32 %v5151_v30, %v4660_v31  ;;  %v5536_v30 = vld [vmem:[%s5895_s21 + $0xa8] sm:$0xff]  }
 0x24e   : > { %v5152_v33 = vpop.f32.mrb[6].mxu1  ;;  %v959_v37 = vadd.f32 %v4660_v31, %v958_v32 }
 0x24f   : > { %v970_v35 = vadd.f32 %v5152_v33, %v4660_v31  ;;  %v961_v36 = vpop.f32.mrb[7].mxu1 }
 0x250   : > { %v962_v38 = vadd.f32 %v4660_v31, %v961_v36  ;;  %v5538_v36 = vld [vmem:[%s5895_s21 + $0xb0] sm:$0xff]  }
 0x251   : > { %v5415_v40 = vpack.c.bf16 %v970_v35, %v967_v34  ;;  %v5537_v35 = vld [vmem:[%s5895_s21 + $0x28] sm:$0xff]  }
 0x252   : > { %v5409_v41 = vpack.c.bf16 %v962_v38, %v959_v37  ;;  %v5539_v37 = vld [vmem:[%s5895_s21 + $0x30] sm:$0xff]   ;;  %v5540_v38 = vld [vmem:[%s5895_s21 + $0xb8] sm:$0xff]  }
 0x253   : > { %5417 = vmatprep.subr.msk.bf16.mxu1 %vm6017_vm3, %v5415_v40 }
 0x254   : > { %5411 = vmatprep.subr.msk.bf16.mxu0 %vm6017_vm3, %v5409_v41  ;;  %5420 = vmatpush3.bf16.xpose.msk.msra.mxu1 %vm6017_vm3, %v5415_v40  ;;  %v5541_v40 = vld [vmem:[%s5895_s21 + $0x38] sm:$0xff]  }
 0x255   : > { %5414 = vmatpush3.bf16.xpose.msk.msra.mxu0 %vm6017_vm3, %v5409_v41  ;;  %5422 = vmatprep.subr.bf16.mxu1 %v5421_v29  ;;  %v5542_v41 = vld [vmem:[%s5895_s21 + $0x120] sm:$0xff]  }
 0x256   : > { %5426 = vmatprep.subr.bf16.mxu0 %v5425_v28 }
 0x25b   : > { %5177 = vmatmul.mubr.msk.f32.vlgmr.msra.gmra.mrb[8].mxu1 %vm1063_vm2, %v880_v42  ;;  %v5543_v42 = vld [vmem:[%s5895_s21 + $0x128] sm:$0xff]  }
 0x25c   : > { %5170 = vmatmul.mubr.msk.f32.vlgmr.msra.gmra.mrb[4].mxu0 %vm1063_vm2, %v872_v43  ;;  %5424 = vmatpush3.bf16.msra.mxu1 %v5421_v29  ;;  %v5544_v43 = vld [vmem:[%s5895_s21 + $0x130] sm:$0xff]  }
 0x25d   : > { %5428 = vmatpush3.bf16.msra.mxu0 %v5425_v28  ;;  %5193 = vmatprep.subr.bf16.mxu1 %v5535_v21 }
 0x25e   : > { %5205 = vmatprep.subr.bf16.mxu0 %v5534_v20 }
 0x32e   : > { %v5178_v50 = vpop.f32.mrb[8].mxu1 }
 0x32f   : > { %v1245_v51 = vsel %vm6034_vm4, %v5178_v50, -1e+30  ;;  %v5171_v52 = vpop.f32.mrb[4].mxu0  ;;  %v1229_v53 = vpop.f32.mrb[9].mxu1 }
 0x330   : > { %v1244_v54 = vsel %vm6039_vm5, %v1229_v53, -1e+30  ;;  %v1142_v55 = vpop.f32.mrb[5].mxu0  ;;  %v1255_v56 = vsel %vm1063_vm2, %v1245_v51, -inf  ;;  %v1243_v57 = vsel %vm6034_vm4, %v5171_v52, -1e+30 }
 0x331   : > { %1256 = vmax.xlane.f32.xlu1 %v1255_v56  ;;  %v1252_v58 = vsel %vm1063_vm2, %v1244_v54, -inf  ;;  %v1242_v59 = vsel %vm6039_vm5, %v1142_v55, -1e+30  ;;  %v1249_v60 = vsel %vm1063_vm2, %v1243_v57, -inf  ;;  %v4720_v55 = vld [vmem:[%s5904_s29 + $0x5] ss:$0 sm:$0xff] }
 0x332   : > { %1253 = vmax.xlane.f32.xlu0 %v1252_v58  ;;  %v1246_v61 = vsel %vm1063_vm2, %v1242_v59, -inf }
 0x335   : > { %1250 = vmax.xlane.f32.xlu1 %v1249_v60 }
 0x336   : > { %1247 = vmax.xlane.f32.xlu0 %v1246_v61  ;;  %v4704_v61 = vld [vmem:[%s5904_s29 + $0x1] ss:$0 sm:$0xff] }
 0x3be   : > { %v1257_v62 = vpop.xlane.xlu1 %1256 }
 0x3bf   : > { %v1261_v63 = vsub.f32 %v1245_v51, %v1257_v62  ;;  %v1254_v0 = vpop.xlane.xlu0 %1253 }
 0x3c0   : > { %v1260_v1 = vsub.f32 %v1244_v54, %v1254_v0 }
 0x3c1   : > { %v1268_v2 = vmul.f32 1.442695, %v1261_v63 }
 0x3c2   : > { %v1266_v3 = vmul.f32 1.442695, %v1260_v1  ;;  %v1251_v5 = vpop.xlane.xlu1 %1250 }
 0x3c3   : > { %5610 = vpow2.f32 %v1268_v2  ;;  %v1259_v6 = vsub.f32 %v1243_v57, %v1251_v5  ;;  %v1248_v7 = vpop.xlane.xlu0 %1247 }
 0x3c4   : > { %5612 = vpow2.f32 %v1266_v3  ;;  %v1258_v9 = vsub.f32 %v1242_v59, %v1248_v7 }
 0x3c5   : > { %v1264_v10 = vmul.f32 1.442695, %v1259_v6 }
 0x3c6   : > { %v1262_v11 = vmul.f32 1.442695, %v1258_v9 }
 0x3c7   : > { %5614 = vpow2.f32 %v1264_v10 }
 0x3c8   : > { %5616 = vpow2.f32 %v1262_v11 }
 0x3cd   : > { %v5611_v12 = vpop.eup %5610 }
 0x3ce   : > { %v5613_v13 = vpop.eup %5612  ;;  %v1279_v14 = vsel %vm1063_vm2, %v5611_v12, 0.0 }
 0x3cf   : > { %1280 = vadd.xlane.f32.xlu1 %v1279_v14  ;;  %v1276_v15 = vsel %vm1063_vm2, %v5613_v13, 0.0 }
 0x3d0   : > { %1277 = vadd.xlane.f32.xlu0 %v1276_v15 }
 0x3d1   : > { %v5615_v16 = vpop.eup %5614 }
 0x3d2   : > { %v5617_v17 = vpop.eup %5616  ;;  %v1273_v18 = vsel %vm1063_vm2, %v5615_v16, 0.0 }
 0x3d3   : > { %1274 = vadd.xlane.f32.xlu1 %v1273_v18  ;;  %v1270_v19 = vsel %vm1063_vm2, %v5617_v17, 0.0 }
 0x3d4   : > { %1271 = vadd.xlane.f32.xlu0 %v1270_v19 }
 0x45c   : > { %v1281_v22 = vpop.xlane.xlu1 %1280 }
 0x45d   : > { %5618 = vrcp.f32 %v1281_v22  ;;  %v1278_v23 = vpop.xlane.xlu0 %1277 }
 0x45e   : > { %5620 = vrcp.f32 %v1278_v23 }
 0x460   : > { %v1275_v24 = vpop.xlane.xlu1 %1274 }
 0x461   : > { %5622 = vrcp.f32 %v1275_v24  ;;  %v1272_v25 = vpop.xlane.xlu0 %1271 }
 0x462   : > { %5624 = vrcp.f32 %v1272_v25 }
 0x467   : > { %v5619_v26 = vpop.eup %5618 }
 0x468   : > { %v5621_v27 = vpop.eup %5620  ;;  %v1289_v29 = vmul.f32 %v5619_v26, %v5611_v12  ;;  %v4736_v12 = vld [vmem:[%s5904_s29 + $0x9] ss:$0 sm:$0xff] }
 0x469   : > { %v1287_v28 = vmul.f32 %v5621_v27, %v5613_v13 }
 0x46b   : > { %v5623_v31 = vpop.eup %5622  ;;  %5190 = vmatprep.mubr.msk.f32.mxu0 %vm1063_vm2, %v1287_v28 }
 0x46c   : > { %v5625_v32 = vpop.eup %5624  ;;  %5191 = vmatmul.mubr.msk.f32.vlgmr.msra.gmra.mrb[6].mxu0 %vm1063_vm2, %v1289_v29  ;;  %v1285_v34 = vmul.f32 %v5623_v31, %v5615_v16 }
 0x46d   : > { %5206 = vmatpush3.bf16.msra.mxu0 %v5534_v20  ;;  %5213 = vmatprep.mubr.msk.bf16.mxu0 %vm713_vm1, %v5991_v4  ;;  %v1283_v33 = vmul.f32 %v5625_v32, %v5617_v17 }
 0x46e   : > { %5207 = vmatprep.subr.bf16.mxu0 %v5536_v30 }
 0x46f   : > { %5183 = vmatprep.mubr.msk.f32.mxu1 %vm1063_vm2, %v1283_v33 }
 0x470   : > { %5184 = vmatmul.mubr.msk.f32.vlgmr.msra.gmra.mrb[10].mxu1 %vm1063_vm2, %v1285_v34 }
 0x471   : > { %5194 = vmatpush3.bf16.msra.mxu1 %v5535_v21  ;;  %5208 = vmatpush3.bf16.msra.mxu0 %v5536_v30 }
 0x472   : > { %5201 = vmatprep.mubr.msk.bf16.mxu1 %vm713_vm1, %v5991_v4  ;;  %5195 = vmatprep.subr.bf16.mxu1 %v5537_v35 }
 0x473   : > { %5209 = vmatprep.subr.bf16.mxu0 %v5538_v36 }
 0x475   : > { %5196 = vmatpush3.bf16.msra.mxu1 %v5537_v35  ;;  %5210 = vmatpush3.bf16.msra.mxu0 %v5538_v36 }
 0x476   : > { %5197 = vmatprep.subr.bf16.mxu1 %v5539_v37  ;;  %5211 = vmatprep.subr.bf16.mxu0 %v5540_v38 }
 0x479   : > { %5198 = vmatpush3.bf16.msra.mxu1 %v5539_v37  ;;  %5212 = vmatpush3.bf16.msra.mxu0 %v5540_v38 }
 0x47a   : > { %5199 = vmatprep.subr.bf16.mxu1 %v5541_v40 }
 0x47c   : > { %5214 = vmatmul.mubr.msk.bf16.vlgmr.msra.gmra.mrb[8].mxu0 %vm713_vm1, %v5997_v8 }
 0x47d   : > { %5200 = vmatpush3.bf16.msra.mxu1 %v5541_v40 }
 0x47e   : > { %5217 = vmatprep.subr.bf16.mxu1 %v5542_v41 }
 0x480   : > { %5202 = vmatmul.mubr.msk.bf16.vlgmr.msra.gmra.mrb[12].mxu1 %vm713_vm1, %v5997_v8 }
 0x481   : > { %5218 = vmatpush3.bf16.msra.mxu1 %v5542_v41  ;;  %5225 = vmatprep.mubr.msk.bf16.mxu1 %vm713_vm1, %v5991_v4 }
 0x482   : > { %5219 = vmatprep.subr.bf16.mxu1 %v5543_v42 }
 0x485   : > { %5220 = vmatpush3.bf16.msra.mxu1 %v5543_v42 }
 0x486   : > { %5221 = vmatprep.subr.bf16.mxu1 %v5544_v43 }
 0x489   : > { %5222 = vmatpush3.bf16.msra.mxu1 %v5544_v43 }
 0x48a   : > { %5223 = vmatprep.subr.bf16.mxu1 %v5545_v44 }
 0x48d   : > { %5224 = vmatpush3.bf16.msra.mxu1 %v5545_v44 }
 0x490   : > { %5226 = vmatmul.mubr.msk.bf16.vlgmr.msra.gmra.mrb[16].mxu1 %vm713_vm1, %v5997_v8 }
 0x53f   : > { %v6087_v46 = vpop.f32.mrb[6].mxu0 }
 0x540   : > { %v6089_v47 = vpop.f32.mrb[7].mxu0 }
 0x541   : > { %v1453_v50 = vpack.c.bf16 %v6087_v46, %v6089_v47  ;;  %v5559_v46 = vld [vmem:[%s5895_s21 + $0xd8] sm:$0xff]  }
 0x543   : > { %v6093_v51 = vpop.f32.mrb[10].mxu1 }
 0x544   : > { %v6095_v52 = vpop.f32.mrb[11].mxu1 }
 0x545   : > { %v1452_v53 = vpack.c.bf16 %v6093_v51, %v6095_v52  ;;  %v5558_v51 = vld [vmem:[%s5895_s21 + $0xd0] sm:$0xff]  }
 0x54f   : > { %v5215_v54 = vpop.f32.mrb[8].mxu0 }
 0x550   : > { %v1621_v56 = vpop.f32.mrb[9].mxu0  ;;  %v1630_v58 = vadd.f32 %v5215_v54, %v4720_v55 }
 0x551   : > { %v5216_v57 = vpop.f32.mrb[10].mxu0  ;;  %v1622_v62 = vadd.f32 %v4720_v55, %v1621_v56 }
 0x552   : > { %v1633_v59 = vadd.f32 %v5216_v57, %v4720_v55  ;;  %v1624_v60 = vpop.f32.mrb[11].mxu0 }
 0x553   : > { %v1625_v63 = vadd.f32 %v4720_v55, %v1624_v60  ;;  %v5203_v0 = vpop.f32.mrb[12].mxu1 }
 0x554   : > { %v5435_v1 = vpack.c.bf16 %v1633_v59, %v1630_v58  ;;  %v1531_v2 = vpop.f32.mrb[13].mxu1  ;;  %v1540_v10 = vadd.f32 %v5203_v0, %v4704_v61 }
 0x555   : > { %v5429_v3 = vpack.c.bf16 %v1625_v63, %v1622_v62  ;;  %v1532_v5 = vadd.f32 %v4704_v61, %v1531_v2  ;;  %v5204_v6 = vpop.f32.mrb[14].mxu1 }
 0x556   : > { %v1534_v7 = vpop.f32.mrb[15].mxu1  ;;  %v1543_v14 = vadd.f32 %v5204_v6, %v4704_v61 }
 0x557   : > { %5431 = vmatprep.subr.msk.bf16.mxu0 %vm6017_vm3, %v5429_v3  ;;  %5233 = vmatprep.mubr.msk.f32.mxu0 %vm1063_vm2, %v1532_v5  ;;  %v1535_v9 = vadd.f32 %v4704_v61, %v1534_v7 }
 0x558   : > { %5434 = vmatpush3.bf16.xpose.msk.msra.mxu0 %vm6017_vm3, %v5429_v3 }
 0x559   : > { %5437 = vmatprep.subr.msk.bf16.mxu0 %vm6017_vm3, %v5435_v1 }
 0x55f   : > { %5234 = vmatmul.mubr.msk.f32.vlgmr.msra.gmra.mrb[12].mxu0 %vm1063_vm2, %v1535_v9 }
 0x560   : > { %5440 = vmatpush3.bf16.xpose.msk.msra.mxu0 %vm6017_vm3, %v5435_v1  ;;  %5240 = vmatprep.mubr.msk.f32.mxu0 %vm1063_vm2, %v1540_v10  ;;  %v5546_v1 = vld [vmem:[%s5895_s21 + $0x40] sm:$0xff]  }
 0x563   : > { %v5227_v11 = vpop.f32.mrb[16].mxu1 }
 0x564   : > { %v1711_v13 = vpop.f32.mrb[17].mxu1  ;;  %v1720_v16 = vadd.f32 %v5227_v11, %v4736_v12 }
 0x565   : > { %v5228_v15 = vpop.f32.mrb[18].mxu1  ;;  %v1712_v19 = vadd.f32 %v4736_v12, %v1711_v13 }
 0x566   : > { %v1723_v17 = vadd.f32 %v5228_v15, %v4736_v12  ;;  %v1714_v18 = vpop.f32.mrb[19].mxu1 }
 0x567   : > { %v1715_v20 = vadd.f32 %v4736_v12, %v1714_v18  ;;  %5241 = vmatmul.mubr.msk.f32.vlgmr.msra.gmra.mrb[14].mxu0 %vm1063_vm2, %v1543_v14  ;;  %v5549_v18 = vld [vmem:[%s5895_s21 + $0x58] sm:$0xff]  }
 0x568   : > { %v5445_v21 = vpack.c.bf16 %v1723_v17, %v1720_v16  ;;  %v5547_v16 = vld [vmem:[%s5895_s21 + $0x48] sm:$0xff]   ;;  %v5548_v17 = vld [vmem:[%s5895_s21 + $0x50] sm:$0xff]  }
 0x569   : > { %v5441_v22 = vpack.c.bf16 %v1715_v20, %v1712_v19  ;;  %v5550_v19 = vld [vmem:[%s5895_s21 + $0x140] sm:$0xff]   ;;  %v5551_v20 = vld [vmem:[%s5895_s21 + $0x148] sm:$0xff]  }
 0x56a   : > { %5446 = vmatprep.subr.bf16.mxu1 %v5445_v21 }
 0x56b   : > { %5442 = vmatprep.subr.bf16.mxu0 %v5441_v22  ;;  %5448 = vmatpush3.bf16.msra.mxu1 %v5445_v21  ;;  %v5552_v21 = vld [vmem:[%s5895_s21 + $0x150] sm:$0xff]  }
 0x56c   : > { %5444 = vmatpush3.bf16.msra.mxu0 %v5441_v22  ;;  %5269 = vmatprep.subr.bf16.mxu1 %v5546_v1  ;;  %v5553_v22 = vld [vmem:[%s5895_s21 + $0x158] sm:$0xff]  }
 0x632   : > { %v5235_v23 = vpop.f32.mrb[12].mxu0 }
 0x633   : > { %v1901_v24 = vsel %vm6034_vm4, %v5235_v23, -1e+30  ;;  %v1804_v25 = vpop.f32.mrb[13].mxu0  ;;  %v5554_v23 = vld [vmem:[%s5890_s20 + $0x8] sm:$0xff]  }
 0x634   : > { %v1900_v26 = vsel %vm6039_vm5, %v1804_v25, -1e+30  ;;  %v1907_v27 = vsel %vm1063_vm2, %v1901_v24, -inf  ;;  %5257 = vmatprep.subr.bf16.mxu0 %v5554_v23 }
 0x635   : > { %1908 = vmax.xlane.f32.xlu1 %v1907_v27  ;;  %v1904_v28 = vsel %vm1063_vm2, %v1900_v26, -inf }
 0x636   : > { %1905 = vmax.xlane.f32.xlu0 %v1904_v28 }
 0x63a   : > { %v5242_v29 = vpop.f32.mrb[14].mxu0 }
 0x63b   : > { %v1903_v30 = vsel %vm6034_vm4, %v5242_v29, -1e+30  ;;  %v1891_v31 = vpop.f32.mrb[15].mxu0 }
 0x63c   : > { %v1902_v32 = vsel %vm6039_vm5, %v1891_v31, -1e+30  ;;  %v1913_v33 = vsel %vm1063_vm2, %v1903_v30, -inf  ;;  %v5556_v31 = vld [vmem:[%s5895_s21 + $0xc0] sm:$0xff]  }
 0x63d   : > { %1914 = vmax.xlane.f32.xlu1 %v1913_v33  ;;  %v1910_v34 = vsel %vm1063_vm2, %v1902_v32, -inf  ;;  %v5557_v33 = vld [vmem:[%s5895_s21 + $0xc8] sm:$0xff]  }
 0x63e   : > { %1911 = vmax.xlane.f32.xlu0 %v1910_v34 }
 0x6c2   : > { %v1909_v35 = vpop.xlane.xlu1 %1908 }
 0x6c3   : > { %v1917_v36 = vsub.f32 %v1901_v24, %v1909_v35  ;;  %v1906_v37 = vpop.xlane.xlu0 %1905  ;;  %v5555_v24 = vld [vmem:[%s5890_s20] sm:$0xff]  }
 0x6c4   : > { %v1916_v38 = vsub.f32 %v1900_v26, %v1906_v37 }
 0x6c5   : > { %v1922_v40 = vmul.f32 1.442695, %v1917_v36 }
 0x6c6   : > { %v1920_v41 = vmul.f32 1.442695, %v1916_v38 }
 0x6c7   : > { %5626 = vpow2.f32 %v1922_v40  ;;  %v4804_v40 = vld [vmem:[%s5904_s29 + $0xa] ss:$0 sm:$0xff] }
 0x6c8   : > { %5628 = vpow2.f32 %v1920_v41 }
 0x6ca   : > { %v1915_v42 = vpop.xlane.xlu1 %1914 }
 0x6cb   : > { %v1919_v43 = vsub.f32 %v1903_v30, %v1915_v42  ;;  %v1912_v44 = vpop.xlane.xlu0 %1911 }
 0x6cc   : > { %v1918_v54 = vsub.f32 %v1902_v32, %v1912_v44  ;;  %v4772_v32 = vld [vmem:[%s5904_s29 + $0x2] ss:$0 sm:$0xff] }
 0x6cd   : > { %v1926_v55 = vmul.f32 1.442695, %v1919_v43 }
 0x6ce   : > { %v1924_v56 = vmul.f32 1.442695, %v1918_v54 }
 0x6cf   : > { %5630 = vpow2.f32 %v1926_v55 }
 0x6d0   : > { %5632 = vpow2.f32 %v1924_v56 }
 0x6d1   : > { %v5627_v57 = vpop.eup %5626 }
 0x6d2   : > { %v5629_v58 = vpop.eup %5628  ;;  %v1931_v59 = vsel %vm1063_vm2, %v5627_v57, 0.0 }
 0x6d3   : > { %1932 = vadd.xlane.f32.xlu1 %v1931_v59  ;;  %v1928_v60 = vsel %vm1063_vm2, %v5629_v58, 0.0 }
 0x6d4   : > { %1929 = vadd.xlane.f32.xlu0 %v1928_v60  ;;  %v4788_v60 = vld [vmem:[%s5904_s29 + $0x6] ss:$0 sm:$0xff] }
 0x6d9   : > { %v5631_v61 = vpop.eup %5630 }
 0x6da   : > { %v5633_v62 = vpop.eup %5632  ;;  %v1937_v63 = vsel %vm1063_vm2, %v5631_v61, 0.0 }
 0x6db   : > { %1938 = vadd.xlane.f32.xlu1 %v1937_v63  ;;  %v1934_v0 = vsel %vm1063_vm2, %v5633_v62, 0.0 }
 0x6dc   : > { %1935 = vadd.xlane.f32.xlu0 %v1934_v0 }
 0x760   : > { %v1933_v2 = vpop.xlane.xlu1 %1932 }
 0x761   : > { %5634 = vrcp.f32 %v1933_v2  ;;  %v1930_v3 = vpop.xlane.xlu0 %1929 }
 0x762   : > { %5636 = vrcp.f32 %v1930_v3 }
 0x768   : > { %v1939_v5 = vpop.xlane.xlu1 %1938 }
 0x769   : > { %5638 = vrcp.f32 %v1939_v5  ;;  %v1936_v6 = vpop.xlane.xlu0 %1935 }
 0x76a   : > { %5640 = vrcp.f32 %v1936_v6  ;;  %v5560_v6 = vld [vmem:[%s5895_s21 + $0x60] sm:$0xff]  }
 0x76b   : > { %v5635_v7 = vpop.eup %5634 }
 0x76c   : > { %v5637_v9 = vpop.eup %5636  ;;  %v1943_v11 = vmul.f32 %v5635_v7, %v5627_v57 }
 0x76d   : > { %v1941_v10 = vmul.f32 %v5637_v9, %v5629_v58  ;;  %v5561_v9 = vld [vmem:[%s5895_s21 + $0x68] sm:$0xff]  }
 0x76f   : > { %5247 = vmatprep.mubr.msk.f32.mxu0 %vm1063_vm2, %v1941_v10  ;;  %v5562_v10 = vld [vmem:[%s5895_s21 + $0x70] sm:$0xff]  }
 0x770   : > { %5248 = vmatmul.mubr.msk.f32.vlgmr.msra.gmra.mrb[16].mxu0 %vm1063_vm2, %v1943_v11  ;;  %v5563_v11 = vld [vmem:[%s5895_s21 + $0x78] sm:$0xff]  }
 0x771   : > { %5258 = vmatpush3.bf16.msra.mxu0 %v5554_v23 }
 0x772   : > { %5263 = vmatprep.subr.bf16.mxu0 %v5555_v24 }
 0x773   : > { %v5639_v12 = vpop.eup %5638 }
 0x774   : > { %v5641_v13 = vpop.eup %5640  ;;  %v1947_v15 = vmul.f32 %v5639_v12, %v5631_v61  ;;  %v5564_v12 = vld [vmem:[%s5895_s21 + $0x160] sm:$0xff]  }
 0x775   : > { %v1945_v14 = vmul.f32 %v5641_v13, %v5633_v62  ;;  %v5565_v13 = vld [vmem:[%s5895_s21 + $0x168] sm:$0xff]  }
 0x777   : > { %5254 = vmatprep.mubr.msk.f32.mxu1 %vm1063_vm2, %v1945_v14  ;;  %v5566_v14 = vld [vmem:[%s5895_s21 + $0x170] sm:$0xff]  }
 0x778   : > { %5255 = vmatmul.mubr.msk.f32.vlgmr.msra.gmra.mrb[20].mxu1 %vm1063_vm2, %v1947_v15  ;;  %v5567_v15 = vld [vmem:[%s5895_s21 + $0x178] sm:$0xff]  }
 0x779   : > { %5270 = vmatpush3.bf16.msra.mxu1 %v5546_v1  ;;  %5277 = vmatprep.mubr.msk.bf16.mxu1 %vm713_vm1, %v5991_v4 }
 0x77a   : > { %5271 = vmatprep.subr.bf16.mxu1 %v5547_v16 }
 0x77d   : > { %5272 = vmatpush3.bf16.msra.mxu1 %v5547_v16 }
 0x77e   : > { %5273 = vmatprep.subr.bf16.mxu1 %v5548_v17 }
 0x781   : > { %5274 = vmatpush3.bf16.msra.mxu1 %v5548_v17 }
 0x782   : > { %5275 = vmatprep.subr.bf16.mxu1 %v5549_v18 }
 0x785   : > { %5276 = vmatpush3.bf16.msra.mxu1 %v5549_v18 }
 0x786   : > { %5293 = vmatprep.subr.bf16.mxu1 %v5550_v19 }
 0x788   : > { %5278 = vmatmul.mubr.msk.bf16.vlgmr.msra.gmra.mrb[24].mxu1 %vm713_vm1, %v5997_v8 }
 0x789   : > { %5294 = vmatpush3.bf16.msra.mxu1 %v5550_v19  ;;  %5301 = vmatprep.mubr.msk.bf16.mxu1 %vm713_vm1, %v5991_v4 }
 0x78a   : > { %5295 = vmatprep.subr.bf16.mxu1 %v5551_v20 }
 0x78d   : > { %5296 = vmatpush3.bf16.msra.mxu1 %v5551_v20 }
 0x78e   : > { %5297 = vmatprep.subr.bf16.mxu1 %v5552_v21 }
 0x791   : > { %5298 = vmatpush3.bf16.msra.mxu1 %v5552_v21 }
 0x792   : > { %5299 = vmatprep.subr.bf16.mxu1 %v5553_v22 }
 0x795   : > { %5300 = vmatpush3.bf16.msra.mxu1 %v5553_v22 }
 0x798   : > { %5302 = vmatmul.mubr.msk.bf16.vlgmr.msra.gmra.mrb[28].mxu1 %vm713_vm1, %v5997_v8 }
 0x843   : > { %v5249_v25 = vpop.f32.mrb[16].mxu0 }
 0x844   : > { %v2020_v26 = vpop.f32.mrb[17].mxu0 }
 0x845   : > { %v2110_v27 = vpack.c.bf16 %v5249_v25, %v2020_v26 }
 0x847   : > { %5259 = vmatprep.mubr.msk.bf16.mxu0 %vm1063_vm2, %v2110_v27 }
 0x84b   : > { %v5256_v28 = vpop.f32.mrb[20].mxu1 }
 0x84c   : > { %v2101_v29 = vpop.f32.mrb[21].mxu1 }
 0x84d   : > { %v2111_v30 = vpack.c.bf16 %v5256_v28, %v2101_v29  ;;  %v6217_v28 = vld [vmem:[%s5904_s29 + $0x3] ss:$0 sm:$0xff] }
 0x84f   : > { %5260 = vmatmul.mubr.msk.bf16.vlgmr.msra.gmra.mrb[20].mxu0 %vm1063_vm2, %v2111_v30 }
 0x850   : > { %5264 = vmatpush3.bf16.msra.mxu0 %v5555_v24  ;;  %5265 = vmatprep.mubr.msk.bf16.mxu0 %vm1063_vm2, %v1452_v53 }
 0x851   : > { %5281 = vmatprep.subr.bf16.mxu0 %v5556_v31 }
 0x85b   : > { %v5279_v34 = vpop.f32.mrb[24].mxu1  ;;  %5266 = vmatmul.mubr.msk.bf16.vlgmr.msra.gmra.mrb[20].mxu0 %vm1063_vm2, %v1453_v50 }
 0x85c   : > { %v2321_v35 = vadd.f32 %v5279_v34, %v4772_v32  ;;  %v2312_v36 = vpop.f32.mrb[25].mxu1  ;;  %5282 = vmatpush3.bf16.msra.mxu0 %v5556_v31  ;;  %5289 = vmatprep.mubr.msk.bf16.mxu0 %vm713_vm1, %v5991_v4 }
 0x85d   : > { %v5280_v37 = vpop.f32.mrb[26].mxu1  ;;  %5283 = vmatprep.subr.bf16.mxu0 %v5557_v33  ;;  %v2313_v47 = vadd.f32 %v4772_v32, %v2312_v36  ;;  %v4869_v36 = vld [vmem:[%s5904_s29 + $0xb] ss:$0 sm:$0xff] }
 0x85e   : > { %v2324_v52 = vadd.f32 %v5280_v37, %v4772_v32  ;;  %v2315_v53 = vpop.f32.mrb[27].mxu1  ;;  %5316 = vmatprep.mubr.msk.f32.mxu1 %vm1063_vm2, %v2321_v35 }
 0x85f   : > { %v2316_v38 = vadd.f32 %v4772_v32, %v2315_v53 }
 0x860   : > { %5284 = vmatpush3.bf16.msra.mxu0 %v5557_v33 }
 0x861   : > { %5285 = vmatprep.subr.bf16.mxu0 %v5558_v51 }
 0x864   : > { %5286 = vmatpush3.bf16.msra.mxu0 %v5558_v51 }
 0x865   : > { %5287 = vmatprep.subr.bf16.mxu0 %v5559_v46 }
 0x868   : > { %5288 = vmatpush3.bf16.msra.mxu0 %v5559_v46 }
 0x86b   : > { %5290 = vmatmul.mubr.msk.bf16.vlgmr.msra.gmra.mrb[24].mxu0 %vm713_vm1, %v5997_v8  ;;  %v5303_v50 = vpop.f32.mrb[28].mxu1 }
 0x86c   : > { %v2492_v41 = vpop.f32.mrb[29].mxu1  ;;  %5309 = vmatprep.mubr.msk.f32.mxu0 %vm1063_vm2, %v2313_v47  ;;  %v2501_v43 = vadd.f32 %v5303_v50, %v4804_v40 }
 0x86d   : > { %v5304_v42 = vpop.f32.mrb[30].mxu1  ;;  %v2493_v55 = vadd.f32 %v4804_v40, %v2492_v41 }
 0x86e   : > { %v2504_v44 = vadd.f32 %v5304_v42, %v4804_v40  ;;  %v2495_v54 = vpop.f32.mrb[31].mxu1 }
 0x86f   : > { %v2496_v56 = vadd.f32 %v4804_v40, %v2495_v54 }
 0x870   : > { %v6174_v57 = vpack.c.bf16 %v2504_v44, %v2501_v43 }
 0x871   : > { %v5461_v58 = vpack.c.bf16 %v2496_v56, %v2493_v55 }
 0x93e   : > { %v5291_v59 = vpop.f32.mrb[24].mxu0 }
 0x93f   : > { %v2402_v61 = vpop.f32.mrb[25].mxu0  ;;  %v2411_v63 = vadd.f32 %v5291_v59, %v4788_v60 }
 0x940   : > { %v5292_v62 = vpop.f32.mrb[26].mxu0  ;;  %v2403_v2 = vadd.f32 %v4788_v60, %v2402_v61 }
 0x941   : > { %v2414_v0 = vadd.f32 %v5292_v62, %v4788_v60  ;;  %v2405_v1 = vpop.f32.mrb[27].mxu0 }
 0x942   : > { %v2406_v3 = vadd.f32 %v4788_v60, %v2405_v1 }
 0x943   : > { %v5455_v5 = vpack.c.bf16 %v2414_v0, %v2411_v63 }
 0x944   : > { %v5449_v7 = vpack.c.bf16 %v2406_v3, %v2403_v2 }
 0x945   : > { %5457 = vmatprep.subr.msk.bf16.mxu1 %vm6017_vm3, %v5455_v5 }
 0x946   : > { %5451 = vmatprep.subr.msk.bf16.mxu0 %vm6017_vm3, %v5449_v7  ;;  %5460 = vmatpush3.bf16.xpose.msk.msra.mxu1 %vm6017_vm3, %v5455_v5 }
 0x947   : > { %5454 = vmatpush3.bf16.xpose.msk.msra.mxu0 %vm6017_vm3, %v5449_v7  ;;  %5339 = vmatprep.subr.bf16.mxu1 %v5560_v6 }
 0x948   : > { %5462 = vmatprep.subr.bf16.mxu0 %v5461_v58 }
 0x94d   : > { %5317 = vmatmul.mubr.msk.f32.vlgmr.msra.gmra.mrb[22].mxu1 %vm1063_vm2, %v2324_v52 }
 0x94e   : > { %5310 = vmatmul.mubr.msk.f32.vlgmr.msra.gmra.mrb[18].mxu0 %vm1063_vm2, %v2316_v38  ;;  %5340 = vmatpush3.bf16.msra.mxu1 %v5560_v6 }
 0x94f   : > { %5347 = vmatprep.mubr.msk.bf16.mxu1 %vm713_vm1, %v5991_v4  ;;  %5464 = vmatpush3.bf16.msra.mxu0 %v5461_v58 }
 0x950   : > { %5466 = vmatprep.subr.bf16.mxu0 %v6174_v57  ;;  %5341 = vmatprep.subr.bf16.mxu1 %v5561_v9 }
 0x952   : > { %5342 = vmatpush3.bf16.msra.mxu1 %v5561_v9 }
 0x953   : > { %5343 = vmatprep.subr.bf16.mxu1 %v5562_v10 }
 0x956   : > { %5344 = vmatpush3.bf16.msra.mxu1 %v5562_v10 }
 0x957   : > { %5345 = vmatprep.subr.bf16.mxu1 %v5563_v11 }
 0x95a   : > { %5346 = vmatpush3.bf16.msra.mxu1 %v5563_v11 }
 0x95b   : > { %5363 = vmatprep.subr.bf16.mxu1 %v5564_v12 }
 0x95d   : > { %5348 = vmatmul.mubr.msk.bf16.vlgmr.msra.gmra.mrb[32].mxu1 %vm713_vm1, %v5997_v8 }
 0x95e   : > { %5364 = vmatpush3.bf16.msra.mxu1 %v5564_v12  ;;  %5371 = vmatprep.mubr.msk.bf16.mxu1 %vm713_vm1, %v5991_v4 }
 0x95f   : > { %5365 = vmatprep.subr.bf16.mxu1 %v5565_v13 }
 0x962   : > { %5366 = vmatpush3.bf16.msra.mxu1 %v5565_v13 }
 0x963   : > { %5367 = vmatprep.subr.bf16.mxu1 %v5566_v14 }
 0x966   : > { %5368 = vmatpush3.bf16.msra.mxu1 %v5566_v14 }
 0x967   : > { %5369 = vmatprep.subr.bf16.mxu1 %v5567_v15 }
 0x96a   : > { %5370 = vmatpush3.bf16.msra.mxu1 %v5567_v15 }
 0x96d   : > { %5372 = vmatmul.mubr.msk.bf16.vlgmr.msra.gmra.mrb[36].mxu1 %vm713_vm1, %v5997_v8 }
 0xa20   : > { %v5318_v16 = vpop.f32.mrb[22].mxu1 }
 0xa21   : > { %v5311_v17 = vpop.f32.mrb[18].mxu0  ;;  %v2672_v18 = vpop.f32.mrb[23].mxu1  ;;  %v2684_v23 = vsel %vm6034_vm4, %v5318_v16, -1e+30 }
 0xa22   : > { %v2682_v19 = vsel %vm6034_vm4, %v5311_v17, -1e+30  ;;  %v2585_v20 = vpop.f32.mrb[19].mxu0  ;;  %v2683_v25 = vsel %vm6039_vm5, %v2672_v18, -1e+30  ;;  %v2694_v26 = vsel %vm1063_vm2, %v2684_v23, -inf }
 0xa23   : > { %v2681_v21 = vsel %vm6039_vm5, %v2585_v20, -1e+30  ;;  %v2688_v22 = vsel %vm1063_vm2, %v2682_v19, -inf  ;;  %v2691_v27 = vsel %vm1063_vm2, %v2683_v25, -inf }
 0xa24   : > { %2689 = vmax.xlane.f32.xlu1 %v2688_v22  ;;  %v2685_v24 = vsel %vm1063_vm2, %v2681_v21, -inf  ;;  %v5568_v22 = vld [vmem:[%s5890_s20 + $0x10] sm:$0xff]  }
 0xa25   : > { %2686 = vmax.xlane.f32.xlu0 %v2685_v24 }
 0xa28   : > { %2695 = vmax.xlane.f32.xlu1 %v2694_v26 }
 0xa29   : > { %2692 = vmax.xlane.f32.xlu0 %v2691_v27 }
 0xa30   : > { %v5349_v29 = vpop.f32.mrb[32].mxu1 }
 0xa31   : > { %v6220_v30 = vadd.f32 %v5349_v29, %v6217_v28  ;;  %v6222_v31 = vpop.f32.mrb[33].mxu1 }
 0xa32   : > { %v5350_v32 = vpop.f32.mrb[34].mxu1 }
 0xa33   : > { %v6225_v33 = vadd.f32 %v5350_v32, %v6217_v28  ;;  %v3039_v34 = vpop.f32.mrb[35].mxu1  ;;  %v5570_v32 = vld [vmem:[%s5895_s21 + $0xe8] sm:$0xff]  }
 0xa34   : > { %v6228_v35 = vadd.f32 %v6217_v28, %v3039_v34  ;;  %v5571_v34 = vld [vmem:[%s5895_s21 + $0xf0] sm:$0xff]  }
 0xa40   : > { %v5373_v37 = vpop.f32.mrb[36].mxu1 }
 0xa41   : > { %v3225_v51 = vadd.f32 %v5373_v37, %v4869_v36  ;;  %v3216_v52 = vpop.f32.mrb[37].mxu1  ;;  %v3037_v37 = vadd.f32 %v6217_v28, %v6222_v31 }
 0xa42   : > { %v5374_v53 = vpop.f32.mrb[38].mxu1  ;;  %v3217_v47 = vadd.f32 %v4869_v36, %v3216_v52  ;;  %v4853_v52 = vld [vmem:[%s5904_s29 + $0x7] ss:$0 sm:$0xff] }
 0xa43   : > { %v3228_v38 = vadd.f32 %v5374_v53, %v4869_v36  ;;  %v3219_v46 = vpop.f32.mrb[39].mxu1 }
 0xa44   : > { %v3220_v50 = vadd.f32 %v4869_v36, %v3219_v46  ;;  %v5572_v36 = vld [vmem:[%s5895_s21 + $0xf8] sm:$0xff]  }
 0xa45   : > { %v6231_v40 = vpack.c.bf16 %v3228_v38, %v3225_v51 }
 0xa46   : > { %v5481_v41 = vpack.c.bf16 %v3220_v50, %v3217_v47 }
 0xa48   : > { %5482 = vmatprep.subr.bf16.mxu1 %v5481_v41 }
 0xa49   : > { %5484 = vmatpush3.bf16.msra.mxu1 %v5481_v41 }
 0xab1   : > { %v2690_v42 = vpop.xlane.xlu1 %2689 }
 0xab2   : > { %v2698_v43 = vsub.f32 %v2682_v19, %v2690_v42  ;;  %v2687_v44 = vpop.xlane.xlu0 %2686 }
 0xab3   : > { %v2697_v54 = vsub.f32 %v2681_v21, %v2687_v44 }
 0xab4   : > { %v2703_v55 = vmul.f32 1.442695, %v2698_v43 }
 0xab5   : > { %v2701_v56 = vmul.f32 1.442695, %v2697_v54  ;;  %v2696_v58 = vpop.xlane.xlu1 %2695 }
 0xab6   : > { %5642 = vpow2.f32 %v2703_v55  ;;  %v2700_v59 = vsub.f32 %v2684_v23, %v2696_v58  ;;  %v2693_v60 = vpop.xlane.xlu0 %2692  ;;  %v5569_v23 = vld [vmem:[%s5895_s21 + $0xe0] sm:$0xff]  }
 0xab7   : > { %5644 = vpow2.f32 %v2701_v56  ;;  %v2699_v61 = vsub.f32 %v2683_v25, %v2693_v60 }
 0xab8   : > { %v2707_v62 = vmul.f32 1.442695, %v2700_v59 }
 0xab9   : > { %v2705_v63 = vmul.f32 1.442695, %v2699_v61 }
 0xaba   : > { %5646 = vpow2.f32 %v2707_v62 }
 0xabb   : > { %5648 = vpow2.f32 %v2705_v63 }
 0xac0   : > { %v5643_v0 = vpop.eup %5642 }
 0xac1   : > { %v5645_v1 = vpop.eup %5644  ;;  %v2712_v2 = vsel %vm1063_vm2, %v5643_v0, 0.0 }
 0xac2   : > { %2713 = vadd.xlane.f32.xlu1 %v2712_v2  ;;  %v2709_v3 = vsel %vm1063_vm2, %v5645_v1, 0.0 }
 0xac3   : > { %2710 = vadd.xlane.f32.xlu0 %v2709_v3 }
 0xac4   : > { %v5647_v5 = vpop.eup %5646 }
 0xac5   : > { %v5649_v6 = vpop.eup %5648  ;;  %v2718_v7 = vsel %vm1063_vm2, %v5647_v5, 0.0 }
 0xac6   : > { %2719 = vadd.xlane.f32.xlu1 %v2718_v7  ;;  %v2715_v9 = vsel %vm1063_vm2, %v5649_v6, 0.0 }
 0xac7   : > { %2716 = vadd.xlane.f32.xlu0 %v2715_v9 }
 0xb4f   : > { %v2714_v10 = vpop.xlane.xlu1 %2713 }
 0xb50   : > { %5650 = vrcp.f32 %v2714_v10  ;;  %v2711_v11 = vpop.xlane.xlu0 %2710 }
 0xb51   : > { %5652 = vrcp.f32 %v2711_v11 }
 0xb53   : > { %v2720_v12 = vpop.xlane.xlu1 %2719 }
 0xb54   : > { %5654 = vrcp.f32 %v2720_v12  ;;  %v2717_v13 = vpop.xlane.xlu0 %2716 }
 0xb55   : > { %5656 = vrcp.f32 %v2717_v13 }
 0xb5a   : > { %v5651_v14 = vpop.eup %5650 }
 0xb5b   : > { %v5653_v15 = vpop.eup %5652  ;;  %v2724_v17 = vmul.f32 %v5651_v14, %v5643_v0 }
 0xb5c   : > { %v2722_v16 = vmul.f32 %v5653_v15, %v5645_v1 }
 0xb5e   : > { %v5655_v18 = vpop.eup %5654  ;;  %5323 = vmatprep.mubr.msk.f32.mxu0 %vm1063_vm2, %v2722_v16 }
 0xb5f   : > { %v5657_v19 = vpop.eup %5656  ;;  %5324 = vmatmul.mubr.msk.f32.vlgmr.msra.gmra.mrb[28].mxu0 %vm1063_vm2, %v2724_v17  ;;  %v2728_v21 = vmul.f32 %v5655_v18, %v5647_v5 }
 0xb60   : > { %5468 = vmatpush3.bf16.msra.mxu0 %v6174_v57  ;;  %v2726_v20 = vmul.f32 %v5657_v19, %v5649_v6 }
 0xb61   : > { %5333 = vmatprep.subr.bf16.mxu0 %v5568_v22 }
 0xb62   : > { %5330 = vmatprep.mubr.msk.f32.mxu0 %vm1063_vm2, %v2726_v20 }
 0xb63   : > { %5331 = vmatmul.mubr.msk.f32.vlgmr.msra.gmra.mrb[30].mxu0 %vm1063_vm2, %v2728_v21 }
 0xb64   : > { %5334 = vmatpush3.bf16.msra.mxu0 %v5568_v22 }
 0xb65   : > { %5351 = vmatprep.subr.bf16.mxu0 %v5569_v23 }
 0xc32   : > { %v5325_v24 = vpop.f32.mrb[28].mxu0 }
 0xc33   : > { %v2801_v25 = vpop.f32.mrb[29].mxu0 }
 0xc34   : > { %v2891_v26 = vpack.c.bf16 %v5325_v24, %v2801_v25 }
 0xc36   : > { %v5332_v27 = vpop.f32.mrb[30].mxu0  ;;  %5335 = vmatprep.mubr.msk.bf16.mxu0 %vm1063_vm2, %v2891_v26  ;;  %v5573_v26 = vld [vmem:[%s5890_s20 + $0x18] sm:$0xff]  }
 0xc37   : > { %v2882_v57 = vpop.f32.mrb[31].mxu0 }
 0xc38   : > { %v2892_v29 = vpack.c.bf16 %v5332_v27, %v2882_v57 }
 0xc3a   : > { %5336 = vmatmul.mubr.msk.bf16.vlgmr.msra.gmra.mrb[20].mxu0 %vm1063_vm2, %v2892_v29 }
 0xc3b   : > { %5352 = vmatpush3.bf16.msra.mxu0 %v5569_v23  ;;  %5359 = vmatprep.mubr.msk.bf16.mxu0 %vm713_vm1, %v5991_v4 }
 0xc3c   : > { %5353 = vmatprep.subr.bf16.mxu0 %v5570_v32 }
 0xc3f   : > { %5354 = vmatpush3.bf16.msra.mxu0 %v5570_v32 }
 0xc40   : > { %5355 = vmatprep.subr.bf16.mxu0 %v5571_v34 }
 0xc43   : > { %5356 = vmatpush3.bf16.msra.mxu0 %v5571_v34 }
 0xc44   : > { %5357 = vmatprep.subr.bf16.mxu0 %v5572_v36 }
 0xc47   : > { %5358 = vmatpush3.bf16.msra.mxu0 %v5572_v36 }
 0xc4a   : > { %5360 = vmatmul.mubr.msk.bf16.vlgmr.msra.gmra.mrb[32].mxu0 %vm713_vm1, %v5997_v8 }
 0xc4b   : > { %5379 = vmatprep.mubr.msk.f32.mxu0 %vm1063_vm2, %v3037_v37  ;;  %v4893_v37 = vld [vmem:[%s6572_s26] ss:$0 sm:$0xff] }
 0xd1d   : > { %v5361_v51 = vpop.f32.mrb[32].mxu0 }
 0xd1e   : > { %v3126_v53 = vpop.f32.mrb[33].mxu0  ;;  %v3135_v38 = vadd.f32 %v5361_v51, %v4853_v52 }
 0xd1f   : > { %v5362_v4 = vpop.f32.mrb[34].mxu0  ;;  %v3127_v50 = vadd.f32 %v4853_v52, %v3126_v53 }
 0xd20   : > { %v3138_v46 = vadd.f32 %v5362_v4, %v4853_v52  ;;  %v3129_v47 = vpop.f32.mrb[35].mxu0 }
 0xd21   : > { %v3130_v41 = vadd.f32 %v4853_v52, %v3129_v47  ;;  %v5698_v47 = vld [vmem:[#allocation2] sm:$0xff] }
 0xd22   : > { %v5475_v42 = vpack.c.bf16 %v3138_v46, %v3135_v38 }
 0xd23   : > { %v5469_v43 = vpack.c.bf16 %v3130_v41, %v3127_v50 }
 0xd25   : > { %5471 = vmatprep.subr.msk.bf16.mxu0 %vm6017_vm3, %v5469_v43 }
 0xd26   : > { %5474 = vmatpush3.bf16.xpose.msk.msra.mxu0 %vm6017_vm3, %v5469_v43  ;;  %v5699_v43 = vld [vmem:[#allocation2 + $0x10] sm:$0xff] }
 0xd27   : > { %5477 = vmatprep.subr.msk.bf16.mxu0 %vm6017_vm3, %v5475_v42 }
 0xd2d   : > { %5380 = vmatmul.mubr.msk.f32.vlgmr.msra.gmra.mrb[36].mxu0 %vm1063_vm2, %v6228_v35 }
 0xd2e   : > { %5480 = vmatpush3.bf16.xpose.msk.msra.mxu0 %vm6017_vm3, %v5475_v42  ;;  %5386 = vmatprep.mubr.msk.f32.mxu0 %vm1063_vm2, %v6220_v30 }
 0xd2f   : > { %5486 = vmatprep.subr.bf16.mxu0 %v6231_v40 }
 0xd35   : > { %5387 = vmatmul.mubr.msk.f32.vlgmr.msra.gmra.mrb[38].mxu0 %vm1063_vm2, %v6225_v33 }
 0xd36   : > { %5488 = vmatpush3.bf16.msra.mxu0 %v6231_v40 }
 0xd37   : > { %5403 = vmatprep.subr.bf16.mxu0 %v5573_v26 }
 0xe00   : > { %v5381_v8 = vpop.f32.mrb[36].mxu0 }
 0xe01   : > { %v3406_v28 = vsel %vm6034_vm4, %v5381_v8, -1e+30  ;;  %v3309_v31 = vpop.f32.mrb[37].mxu0 }
 0xe02   : > { %v3405_v35 = vsel %vm6039_vm5, %v3309_v31, -1e+30  ;;  %v3412_v39 = vsel %vm1063_vm2, %v3406_v28, -inf }
 0xe03   : > { %3413 = vmax.xlane.f32.xlu1 %v3412_v39  ;;  %v3409_v30 = vsel %vm1063_vm2, %v3405_v35, -inf  ;;  %v5701_v39 = vld [vmem:[#allocation2 + $0x18] sm:$0xff] }
 0xe04   : > { %3410 = vmax.xlane.f32.xlu0 %v3409_v30 }
 0xe08   : > { %v5388_v44 = vpop.f32.mrb[38].mxu0 }
 0xe09   : > { %v3408_v33 = vsel %vm6034_vm4, %v5388_v44, -1e+30  ;;  %v3396_v54 = vpop.f32.mrb[39].mxu0 }
 0xe0a   : > { %v3407_v40 = vsel %vm6039_vm5, %v3396_v54, -1e+30  ;;  %v3418_v55 = vsel %vm1063_vm2, %v3408_v33, -inf }
 0xe0b   : > { %3419 = vmax.xlane.f32.xlu1 %v3418_v55  ;;  %v3415_v56 = vsel %vm1063_vm2, %v3407_v40, -inf }
 0xe0c   : > { %3416 = vmax.xlane.f32.xlu0 %v3415_v56 }
 0xe90   : > { %v3414_v58 = vpop.xlane.xlu1 %3413 }
 0xe91   : > { %v3422_v59 = vsub.f32 %v3406_v28, %v3414_v58  ;;  %v3411_v60 = vpop.xlane.xlu0 %3410  ;;  %v5700_v28 = vld [vmem:[#allocation2 + $0x8] sm:$0xff] }
 0xe92   : > { %v3421_v61 = vsub.f32 %v3405_v35, %v3411_v60 }
 0xe93   : > { %v3427_v62 = vmul.f32 1.442695, %v3422_v59 }
 0xe94   : > { %v3425_v63 = vmul.f32 1.442695, %v3421_v61 }
 0xe95   : > { %5658 = vpow2.f32 %v3427_v62 }
 0xe96   : > { %5660 = vpow2.f32 %v3425_v63 }
 0xe98   : > { %v3420_v48 = vpop.xlane.xlu1 %3419 }
 0xe99   : > { %v3424_v0 = vsub.f32 %v3408_v33, %v3420_v48  ;;  %v3417_v1 = vpop.xlane.xlu0 %3416 }
 0xe9a   : > { %v3423_v2 = vsub.f32 %v3407_v40, %v3417_v1 }
 0xe9b   : > { %v3431_v49 = vmul.f32 1.442695, %v3424_v0 }
 0xe9c   : > { %v3429_v3 = vmul.f32 1.442695, %v3423_v2 }
 0xe9d   : > { %5662 = vpow2.f32 %v3431_v49 }
 0xe9e   : > { %5664 = vpow2.f32 %v3429_v3 }
 0xe9f   : > { %v5659_v5 = vpop.eup %5658 }
 0xea0   : > { %v5661_v6 = vpop.eup %5660  ;;  %v3436_v7 = vsel %vm1063_vm2, %v5659_v5, 0.0 }
 0xea1   : > { %3437 = vadd.xlane.f32.xlu1 %v3436_v7  ;;  %v3433_v9 = vsel %vm1063_vm2, %v5661_v6, 0.0 }
 0xea2   : > { %3434 = vadd.xlane.f32.xlu0 %v3433_v9 }
 0xea7   : > { %v5663_v10 = vpop.eup %5662 }
 0xea8   : > { %v5665_v11 = vpop.eup %5664  ;;  %v3442_v12 = vsel %vm1063_vm2, %v5663_v10, 0.0 }
 0xea9   : > { %3443 = vadd.xlane.f32.xlu1 %v3442_v12  ;;  %v3439_v13 = vsel %vm1063_vm2, %v5665_v11, 0.0  ;;  %v5574_v12 = vld [vmem:[%s5918_s3] ss:$8 sps:$4 sm:$0xff]  }
 0xeaa   : > { %3440 = vadd.xlane.f32.xlu0 %v3439_v13  ;;  %v5579_v13 = vld [vmem:[%s5918_s3 + $0x14] ss:$8 sps:$4 sm:$0xff]  }
 0xf2e   : > { %v3438_v14 = vpop.xlane.xlu1 %3437 }
 0xf2f   : > { %5666 = vrcp.f32 %v3438_v14  ;;  %v3435_v15 = vpop.xlane.xlu0 %3434  ;;  %v5577_v14 = vld [vmem:[%s5918_s3 + $0x10] ss:$8 sps:$4 sm:$0xff]  }
 0xf30   : > { %5668 = vrcp.f32 %v3435_v15  ;;  %v5582_v15 = vld [vmem:[%s5918_s3 + $0x24] ss:$8 sps:$4 sm:$0xff]  }
 0xf36   : > { %v3444_v16 = vpop.xlane.xlu1 %3443 }
 0xf37   : > { %5670 = vrcp.f32 %v3444_v16  ;;  %v3441_v17 = vpop.xlane.xlu0 %3440  ;;  %v5580_v16 = vld [vmem:[%s5918_s3 + $0x20] ss:$8 sps:$4 sm:$0xff]  }
 0xf38   : > { %5672 = vrcp.f32 %v3441_v17  ;;  %v5585_v17 = vld [vmem:[%s5918_s3 + $0x34] ss:$8 sps:$4 sm:$0xff]  }
 0xf39   : > { %v5667_v18 = vpop.eup %5666 }
 0xf3a   : > { %v5669_v19 = vpop.eup %5668  ;;  %v3448_v21 = vmul.f32 %v5667_v18, %v5659_v5  ;;  %v5583_v18 = vld [vmem:[%s5918_s3 + $0x30] ss:$8 sps:$4 sm:$0xff]  }
 0xf3b   : > { %v3446_v20 = vmul.f32 %v5669_v19, %v5661_v6  ;;  %v5772_v19 = vmov 0  }
 0xf3d   : > { %5393 = vmatprep.mubr.msk.f32.mxu1 %vm1063_vm2, %v3446_v20 }
 0xf3e   : > { %5394 = vmatmul.mubr.msk.f32.vlgmr.msra.gmra.mrb[40].mxu1 %vm1063_vm2, %v3448_v21 }
 0xf3f   : > { %3874 = vmatprep.mubr.bf16.mxu1 %v5772_v19 }
 0xf41   : > { %v5671_v22 = vpop.eup %5670 }
 0xf42   : > { %v5673_v23 = vpop.eup %5672  ;;  %v3452_v25 = vmul.f32 %v5671_v22, %v5663_v10 }
 0xf43   : > { %v3450_v24 = vmul.f32 %v5673_v23, %v5665_v11  ;;  %v5576_v11 = vld [vmem:[%s5918_s3 + $0x4] ss:$8 sps:$4 sm:$0xff]  }
 0xf44   : > { %3842 = vmatprep.subr.bf16.mxu1 %v5576_v11  ;;  %v3792_v11 = vsub.s32 1, %v6031_v45 }
 0xf45   : > { %5400 = vmatprep.mubr.msk.f32.mxu0 %vm1063_vm2, %v3450_v24  ;;  %3843 = vmatpush1.bf16.msra.mxu1 %v5574_v12 }
 0xf46   : > { %5401 = vmatmul.mubr.msk.f32.vlgmr.msra.gmra.mrb[40].mxu0 %vm1063_vm2, %v3452_v25  ;;  %3844 = vmatprep.subr.bf16.mxu1 %v5579_v13 }
 0xf47   : > { %5404 = vmatpush3.bf16.msra.mxu0 %v5573_v26 }
 0xf49   : > { %3845 = vmatpush1.bf16.msra.mxu1 %v5577_v14 }
 0xf4a   : > { %3846 = vmatprep.subr.bf16.mxu1 %v5582_v15 }
 0xf4d   : > { %3847 = vmatpush1.bf16.msra.mxu1 %v5580_v16 }
 0xf4e   : > { %3848 = vmatprep.subr.bf16.mxu1 %v5585_v17 }
 0xf51   : > { %3849 = vmatpush1.bf16.msra.mxu1 %v5583_v18 }
0x1011   : > { %v5395_v27 = vpop.f32.mrb[40].mxu1 }
0x1012   : > { %v3525_v57 = vpop.f32.mrb[41].mxu1 }
0x1013   : > { %v3615_v29 = vpack.c.bf16 %v5395_v27, %v3525_v57 }
0x1015   : > { %5405 = vmatprep.mubr.msk.bf16.mxu0 %vm1063_vm2, %v3615_v29 }
0x1019   : > { %v5402_v32 = vpop.f32.mrb[40].mxu0 }
0x101a   : > { %v3606_v34 = vpop.f32.mrb[41].mxu0 }
0x101b   : > { %v3616_v36 = vpack.c.bf16 %v5402_v32, %v3606_v34 }
0x101d   : > { %5406 = vmatmul.mubr.msk.bf16.vlgmr.msra.gmra.mrb[20].mxu0 %vm1063_vm2, %v3616_v36 }
0x10f0   : > { %v5407_v51 = vpop.f32.mrb[20].mxu0 }
0x10f1   : > { %v3666_v52 = vpop.f32.mrb[21].mxu0  ;;  %v3694_v53 = vadd.f32 %v5407_v51, %v4893_v37 }
0x10f2   : > { %v3692_v4 = vadd.f32 %v4893_v37, %v3666_v52  ;;  %v5408_v38 = vpop.f32.mrb[22].mxu0 }
0x10f3   : > { %v3669_v46 = vpop.f32.mrb[23].mxu0  ;;  %v3695_v41 = vadd.f32 %v5408_v38, %v4893_v37  ;;  %v6303_v8 = vadd.f32 %v5699_v43, %v3694_v53 }
0x10f4   : > { %v6301_v50 = vadd.f32 %v5698_v47, %v3692_v4  ;;  %v3693_v42 = vadd.f32 %v4893_v37, %v3669_v46  ;;  %v4894_v37 = vld [vmem:[%s665_s18] ss:$0 sm:$0xff]  ;;  %s6575_s18 = sld [smem:[#allocation10_spill]] (!%p4923_p5) }
0x10f5   : > { %v6309_v30 = vadd.f32 %v5701_v39, %v3695_v41  ;;  %v3708_v33 = vsel %vm713_vm1, %v6303_v8, 0.0  ;;  %v4895_v46 = vld [vmem:[%s6573_s13] ss:$0 sm:$0xff] }
0x10f6   : > { %v6305_v31 = vadd.f32 %v5700_v28, %v3693_v42  ;;  %v3702_v35 = vsel %vm713_vm1, %v6301_v50, 0.0 }
0x10f7   : > { %3703 = vadd.xlane.f32.xlu0 %v3702_v35  ;;  %v3711_v54 = vsel %vm713_vm1, %v6309_v30, 0.0 }
0x10f8   : > { %v3705_v44 = vsel %vm713_vm1, %v6305_v31, 0.0 }
0x10f9   : > { %3706 = vadd.xlane.f32.xlu1 %v3705_v44 }
0x10fb   : > { %3709 = vadd.xlane.f32.xlu0 %v3708_v33 }
0x10fd   : > { %3712 = vadd.xlane.f32.xlu1 %v3711_v54 }
0x1184   : > { %v3704_v40 = vpop.xlane.xlu0 %3703 }
0x1185   : > { %v3714_v55 = vmul.f32 0.015625, %v3704_v40 }
0x1186   : > { %v3707_v56 = vpop.xlane.xlu1 %3706 }
0x1187   : > { %v3718_v58 = vsub.f32 %v6301_v50, %v3714_v55  ;;  %v3715_v59 = vmul.f32 0.015625, %v3707_v56  ;;  %v5586_v56 = vld [vmem:[%s5930_s15 + $0x40] sm:$0xff]  }
0x1188   : > { %v3710_v60 = vpop.xlane.xlu0 %3709  ;;  %5101 = vmatprep.subr.bf16.mxu0 %v5586_v56 }
0x1189   : > { %v3719_v61 = vsub.f32 %v6305_v31, %v3715_v59  ;;  %v3716_v62 = vmul.f32 0.015625, %v3710_v60  ;;  %v3722_v63 = vmul.f32 %v3718_v58, %v3718_v58  ;;  %v5588_v59 = vld [vmem:[%s5930_s15 + $0x48] sm:$0xff]  }
0x118a   : > { %v3713_v48 = vpop.xlane.xlu1 %3712  ;;  %v5589_v60 = vld [vmem:[%s5930_s15 + $0x8] sm:$0xff]  }
0x118b   : > { %v3720_v0 = vsub.f32 %v6303_v8, %v3716_v62  ;;  %v3717_v1 = vmul.f32 0.015625, %v3713_v48  ;;  %v3726_v2 = vsel %vm713_vm1, %v3722_v63, 0.0  ;;  %v3723_v49 = vmul.f32 %v3719_v61, %v3719_v61  ;;  %v5591_v62 = vld [vmem:[%s5930_s15 + $0x10] sm:$0xff]   ;;  %v5592_v63 = vld [vmem:[%s5930_s15 + $0x58] sm:$0xff]  }
0x118c   : > { %3727 = vadd.xlane.f32.xlu0 %v3726_v2  ;;  %v5593_v48 = vld [vmem:[%s5930_s15 + $0x18] sm:$0xff]   ;;  %v5596_v2 = vld [vmem:[%s5930_s15 + $0x68] sm:$0xff]  }
0x118d   : > { %v3721_v3 = vsub.f32 %v6309_v30, %v3717_v1  ;;  %v3729_v5 = vsel %vm713_vm1, %v3723_v49, 0.0  ;;  %v3724_v6 = vmul.f32 %v3720_v0, %v3720_v0  ;;  %v5595_v1 = vld [vmem:[%s5930_s15 + $0x20] sm:$0xff]   ;;  %v5597_v49 = vld [vmem:[%s5930_s15 + $0x28] sm:$0xff]  }
0x118e   : > { %3730 = vadd.xlane.f32.xlu1 %v3729_v5  ;;  %v5599_v5 = vld [vmem:[%s5930_s15 + $0x30] sm:$0xff]  }
0x118f   : > { %v3732_v7 = vsel %vm713_vm1, %v3724_v6, 0.0  ;;  %v3725_v9 = vmul.f32 %v3721_v3, %v3721_v3  ;;  %v5600_v6 = vld [vmem:[%s5930_s15 + $0x78] sm:$0xff]  }
0x1190   : > { %3733 = vadd.xlane.f32.xlu0 %v3732_v7  ;;  %v5601_v7 = vld [vmem:[%s5930_s15 + $0x38] sm:$0xff]  }
0x1191   : > { %v3735_v10 = vsel %vm713_vm1, %v3725_v9, 0.0  ;;  %v3788_v9 = vsub.s32 0, %v6031_v45 }
0x1192   : > { %3736 = vadd.xlane.f32.xlu1 %v3735_v10  ;;  %v3784_v10 = vld [vmem:[%s5924_s17] sm:$0x3] }
0x1193   : > { %v3789_v12 = vrot.slane %v3784_v10, %v3788_v9  ;;  %v3793_v13 = vrot.slane %v3784_v10, %v3792_v11 }
0x1219   : > { %v3728_v20 = vpop.xlane.xlu0 %3727 }
0x121a   : > { %v3738_v21 = vmul.f32 0.015625, %v3728_v20 }
0x121b   : > { %v3731_v22 = vpop.xlane.xlu1 %3730 }
0x121c   : > { %v3742_v23 = vadd.f32 1e-05, %v3738_v21  ;;  %v3739_v24 = vmul.f32 0.015625, %v3731_v22 }
0x121d   : > { %v3734_v25 = vpop.xlane.xlu0 %3733 }
0x121e   : > { %5674 = vrsqrt.f32 %v3742_v23  ;;  %v3743_v26 = vadd.f32 1e-05, %v3739_v24  ;;  %v3740_v27 = vmul.f32 0.015625, %v3734_v25 }
0x121f   : > { %v3737_v57 = vpop.xlane.xlu1 %3736 }
0x1220   : > { %5676 = vrsqrt.f32 %v3743_v26  ;;  %v3744_v29 = vadd.f32 1e-05, %v3740_v27  ;;  %v3741_v32 = vmul.f32 0.015625, %v3737_v57 }
0x1222   : > { %5678 = vrsqrt.f32 %v3744_v29  ;;  %v3745_v34 = vadd.f32 1e-05, %v3741_v32 }
0x1224   : > { %5680 = vrsqrt.f32 %v3745_v34 }
0x1228   : > { %v5675_v36 = vpop.eup %5674 }
0x1229   : > { %v3750_v51 = vmul.f32 %v5675_v36, %v3718_v58  ;;  %v5587_v58 = vld [vmem:[%s5930_s15] sm:$0xff]  }
0x122a   : > { %v5677_v52 = vpop.eup %5676  ;;  %5102 = vmatpush3.bf16.msra.mxu0 %v5587_v58 }
0x122b   : > { %v3760_v53 = vmul.f32 %v4894_v37, %v3750_v51  ;;  %v3751_v4 = vmul.f32 %v5677_v52, %v3719_v61  ;;  %5103 = vmatprep.subr.bf16.mxu0 %v5588_v59  ;;  %v5590_v61 = vld [vmem:[%s5930_s15 + $0x50] sm:$0xff]  }
0x122c   : > { %v5679_v38 = vpop.eup %5678 }
0x122d   : > { %v3761_v47 = vmul.f32 %v4894_v37, %v3751_v4  ;;  %v3752_v42 = vmul.f32 %v5679_v38, %v3720_v0  ;;  %v3770_v28 = vadd.f32 %v4895_v46, %v3760_v53  ;;  %v5594_v0 = vld [vmem:[%s5930_s15 + $0x60] sm:$0xff]  }
0x122e   : > { %v5681_v41 = vpop.eup %5680  ;;  %5104 = vmatpush3.bf16.msra.mxu0 %v5589_v60 }
0x122f   : > { %v3753_v43 = vmul.f32 %v5681_v41, %v3721_v3  ;;  %v3771_v35 = vadd.f32 %v4895_v46, %v3761_v47  ;;  %v3762_v33 = vmul.f32 %v4894_v37, %v3752_v42  ;;  %5105 = vmatprep.subr.bf16.mxu0 %v5590_v61  ;;  %v5598_v3 = vld [vmem:[%s5930_s15 + $0x70] sm:$0xff]   ;;  %s6574_s15 = sld [smem:[#allocation12_spill]] (!%p4923_p5) }
0x1231   : > { %v3774_v39 = vpack.c.bf16 %v3771_v35, %v3770_v28  ;;  %v3763_v44 = vmul.f32 %v4894_v37, %v3753_v43  ;;  %v3772_v40 = vadd.f32 %v4895_v46, %v3762_v33 }
0x1232   : > { %5106 = vmatpush3.bf16.msra.mxu0 %v5591_v62 }
0x1233   : > { %4904 = vmatmul.mubr.msk.bf16.vlgmr.msra.gmra.mrb[44].mxu1 %vm713_vm1, %v3774_v39  ;;  %v3773_v54 = vadd.f32 %v4895_v46, %v3763_v44  ;;  %5107 = vmatprep.subr.bf16.mxu0 %v5592_v63 }
0x1234   : > { %3884 = vmatprep.mubr.bf16.mxu1 %v5772_v19 }
0x1235   : > { %v3775_v55 = vpack.c.bf16 %v3773_v54, %v3772_v40 }
0x1236   : > { %5108 = vmatpush3.bf16.msra.mxu0 %v5593_v48 }
0x1237   : > { %5109 = vmatprep.subr.bf16.mxu0 %v5594_v0 }
0x123a   : > { %5110 = vmatpush3.bf16.msra.mxu0 %v5595_v1 }
0x123b   : > { %4905 = vmatmul.mubr.msk.bf16.gmra.mrb[48].mxu1 %vm713_vm1, %v3775_v55  ;;  %5111 = vmatprep.subr.bf16.mxu0 %v5596_v2 }
0x123e   : > { %5112 = vmatpush3.bf16.msra.mxu0 %v5597_v49 }
0x123f   : > { %5113 = vmatprep.subr.bf16.mxu0 %v5598_v3 }
0x1242   : > { %5114 = vmatpush3.bf16.msra.mxu0 %v5599_v5 }
0x1243   : > { %5115 = vmatprep.subr.bf16.mxu0 %v5600_v6 }
0x1246   : > { %5116 = vmatpush3.bf16.msra.mxu0 %v5601_v7 }
0x1306   : > { %v3876_v14 = vpop.f32.mrb[44].mxu1 }
0x1307   : > { %v6364_v15 = vadd.f32 %v3876_v14, %v3789_v12  ;;  %v3878_v16 = vpop.f32.mrb[45].mxu1 }
0x1308   : > { %v6366_v17 = vadd.f32 %v3878_v16, %v3793_v13  ;;  %v3880_v18 = vpop.f32.mrb[46].mxu1 }
0x1309   : > { %v3903_v19 = vmul.f32 0.044715, %v6364_v15  ;;  %v6369_v20 = vadd.f32 %v3880_v18, %v3789_v12  ;;  %v3882_v21 = vpop.f32.mrb[47].mxu1  ;;  %v3895_v18 = vmul.f32 0.5, %v6364_v15 }
0x130a   : > { %v3904_v22 = vmul.f32 0.044715, %v6366_v17  ;;  %v6372_v23 = vadd.f32 %v3882_v21, %v3793_v13 }
0x130b   : > { %v3911_v45 = vmul.f32 %v3903_v19, %v6364_v15  ;;  %v3905_v24 = vmul.f32 0.044715, %v6369_v20  ;;  %v3897_v19 = vmul.f32 0.5, %v6369_v20 }
0x130c   : > { %v3912_v25 = vmul.f32 %v3904_v22, %v6366_v17  ;;  %v3906_v26 = vmul.f32 0.044715, %v6372_v23  ;;  %v3896_v22 = vmul.f32 0.5, %v6366_v17 }
0x130d   : > { %v3919_v27 = vmul.f32 %v3911_v45, %v6364_v15  ;;  %v3913_v57 = vmul.f32 %v3905_v24, %v6369_v20  ;;  %v3898_v45 = vmul.f32 0.5, %v6372_v23 }
0x130e   : > { %v3920_v29 = vmul.f32 %v3912_v25, %v6366_v17  ;;  %v3914_v32 = vmul.f32 %v3906_v26, %v6372_v23  ;;  %v3886_v34 = vpop.f32.mrb[48].mxu1 }
0x130f   : > { %v3927_v36 = vadd.f32 %v3919_v27, %v6364_v15  ;;  %v3921_v37 = vmul.f32 %v3913_v57, %v6369_v20  ;;  %v6384_v51 = vadd.f32 %v3886_v34, %v3789_v12  ;;  %v3888_v52 = vpop.f32.mrb[49].mxu1 }
0x1310   : > { %v3922_v53 = vmul.f32 %v3914_v32, %v6372_v23  ;;  %v6387_v4 = vadd.f32 %v3888_v52, %v3793_v13  ;;  %v3890_v38 = vpop.f32.mrb[50].mxu1  ;;  %v3928_v46 = vadd.f32 %v3920_v29, %v6366_v17 }
0x1311   : > { %v3935_v47 = vmul.f32 0.7978846, %v3927_v36  ;;  %v3929_v41 = vadd.f32 %v3921_v37, %v6369_v20  ;;  %v3907_v42 = vmul.f32 0.044715, %v6384_v51  ;;  %v3891_v43 = vadd.f32 %v3890_v38, %v3789_v12  ;;  %v3892_v28 = vpop.f32.mrb[51].mxu1 }
0x1312   : > { %v3908_v35 = vmul.f32 0.044715, %v6387_v4  ;;  %v3893_v39 = vadd.f32 %v3892_v28, %v3793_v13  ;;  %v3930_v44 = vadd.f32 %v3922_v53, %v6372_v23  ;;  %v3936_v33 = vmul.f32 0.7978846, %v3928_v46 }
0x1313   : > { %5682 = vtanh.f32 %v3935_v47  ;;  %v3937_v54 = vmul.f32 0.7978846, %v3929_v41  ;;  %v3915_v40 = vmul.f32 %v3907_v42, %v6384_v51  ;;  %v3909_v55 = vmul.f32 0.044715, %v3891_v43 }
0x1314   : > { %v3916_v56 = vmul.f32 %v3908_v35, %v6387_v4  ;;  %v3910_v58 = vmul.f32 0.044715, %v3893_v39  ;;  %v3938_v59 = vmul.f32 0.7978846, %v3930_v44  ;;  %5684 = vtanh.f32 %v3936_v33 }
0x1315   : > { %5686 = vtanh.f32 %v3937_v54  ;;  %v3923_v60 = vmul.f32 %v3915_v40, %v6384_v51  ;;  %v3917_v61 = vmul.f32 %v3909_v55, %v3891_v43  ;;  %v3899_v17 = vmul.f32 0.5, %v6384_v51 }
0x1316   : > { %v3924_v62 = vmul.f32 %v3916_v56, %v6387_v4  ;;  %v3918_v63 = vmul.f32 %v3910_v58, %v3893_v39  ;;  %5688 = vtanh.f32 %v3938_v59  ;;  %v3901_v20 = vmul.f32 0.5, %v3891_v43 }
0x1317   : > { %v3925_v48 = vmul.f32 %v3917_v61, %v3891_v43  ;;  %v3931_v0 = vadd.f32 %v3923_v60, %v6384_v51  ;;  %v3900_v38 = vmul.f32 0.5, %v6387_v4  ;;  %v3902_v46 = vmul.f32 0.5, %v3893_v39  ;;  %v4906_v51 = vld [vmem:[%s685_s5] ss:$0 sm:$0xff] }
0x1318   : > { %v3926_v1 = vmul.f32 %v3918_v63, %v3893_v39  ;;  %v3932_v2 = vadd.f32 %v3924_v62, %v6387_v4 }
0x1319   : > { %v3933_v49 = vadd.f32 %v3925_v48, %v3891_v43  ;;  %v3939_v3 = vmul.f32 0.7978846, %v3931_v0 }
0x131a   : > { %v3934_v5 = vadd.f32 %v3926_v1, %v3893_v39  ;;  %v3940_v6 = vmul.f32 0.7978846, %v3932_v2 }
0x131b   : > { %v3941_v7 = vmul.f32 0.7978846, %v3933_v49  ;;  %5690 = vtanh.f32 %v3939_v3 }
0x131c   : > { %v3942_v9 = vmul.f32 0.7978846, %v3934_v5  ;;  %5692 = vtanh.f32 %v3940_v6 }
0x131d   : > { %v5683_v10 = vpop.eup %5682  ;;  %5694 = vtanh.f32 %v3941_v7 }
0x131e   : > { %v5685_v11 = vpop.eup %5684  ;;  %v3951_v12 = vadd.f32 1.0, %v5683_v10  ;;  %5696 = vtanh.f32 %v3942_v9 }
0x131f   : > { %v5687_v13 = vpop.eup %5686  ;;  %v3952_v14 = vadd.f32 1.0, %v5685_v11 }
0x1320   : > { %v5689_v16 = vpop.eup %5688  ;;  %v3953_v21 = vadd.f32 1.0, %v5687_v13  ;;  %v3959_v25 = vmul.f32 %v3951_v12, %v3895_v18 }
0x1321   : > { %v3954_v24 = vadd.f32 1.0, %v5689_v16  ;;  %v3960_v27 = vmul.f32 %v3952_v14, %v3896_v22 }
0x1322   : > { %v3961_v26 = vmul.f32 %v3953_v21, %v3897_v19 }
0x1323   : > { %v3962_v57 = vmul.f32 %v3954_v24, %v3898_v45 }
0x1324   : > { %v3967_v29 = vpack.c.bf16 %v3961_v26, %v3959_v25 }
0x1325   : > { %v5691_v32 = vpop.eup %5690  ;;  %v3968_v34 = vpack.c.bf16 %v3962_v57, %v3960_v27 }
0x1326   : > { %v5693_v36 = vpop.eup %5692  ;;  %v3955_v37 = vadd.f32 1.0, %v5691_v32  ;;  %v5702_v32 = vld [vmem:[%s6574_s15 + $0x4] ss:$16 sps:$4 sm:$0xff] (!%p4923_p5)  }
0x1327   : > { %v5695_v52 = vpop.eup %5694  ;;  %4138 = vmatprep.mubr.bf16.mxu0 %v3968_v34  ;;  %v3956_v15 = vadd.f32 1.0, %v5693_v36  ;;  %v5704_v34 = vld [vmem:[%s6574_s15 + $0xc] ss:$16 sps:$4 sm:$0xff] (!%p4923_p5)   ;;  %v5706_v36 = vld [vmem:[%s6574_s15] ss:$16 sps:$4 sm:$0xff] (!%p4923_p5)   ;;  %4345 = vmatprep.subr.bf16.mxu0 (!%p4923_p5), %v5702_v32 }
0x1328   : > { %v5697_v53 = vpop.eup %5696  ;;  %4139 = vmatmul.mubr.bf16.vlgmr.msra.gmra.mrb[44].mxu0 %v3967_v29  ;;  %v3957_v23 = vadd.f32 1.0, %v5695_v52  ;;  %v3963_v41 = vmul.f32 %v3955_v37, %v3899_v17  ;;  %v5707_v37 = vld [vmem:[%s6574_s15 + $0x8] ss:$16 sps:$4 sm:$0xff] (!%p4923_p5)   ;;  %4398 = vmatprep.subr.bf16.mxu1 (!%p4923_p5), %v5704_v34  ;;  %v5708_v52 = vld [vmem:[%s6574_s15 + $0x24] ss:$16 sps:$4 sm:$0xff] (!%p4923_p5)  }
0x1329   : > { %v3958_v47 = vadd.f32 1.0, %v5697_v53  ;;  %v3964_v28 = vmul.f32 %v3956_v15, %v3900_v38  ;;  %v5710_v15 = vld [vmem:[%s6574_s15 + $0x2c] ss:$16 sps:$4 sm:$0xff] (!%p4923_p5)   ;;  %4346 = vmatpush1.bf16.msra.mxu0 (!%p4923_p5), %v5706_v36  ;;  %4399 = vmatpush1.bf16.msra.mxu1 (!%p4923_p5), %v5707_v37  ;;  %v5712_v53 = vld [vmem:[%s6574_s15 + $0x20] ss:$16 sps:$4 sm:$0xff] (!%p4923_p5)  }
0x132a   : > { %v3965_v42 = vmul.f32 %v3957_v23, %v3901_v20  ;;  %v5713_v17 = vld [vmem:[%s6574_s15 + $0x28] ss:$16 sps:$4 sm:$0xff] (!%p4923_p5)   ;;  %4347 = vmatprep.subr.bf16.mxu0 (!%p4923_p5), %v5708_v52  ;;  %4400 = vmatprep.subr.bf16.mxu1 (!%p4923_p5), %v5710_v15  ;;  %v5714_v20 = vld [vmem:[%s6574_s15 + $0x44] ss:$16 sps:$4 sm:$0xff] (!%p4923_p5)   ;;  %v5716_v23 = vld [vmem:[%s6574_s15 + $0x4c] ss:$16 sps:$4 sm:$0xff] (!%p4923_p5)  }
0x132b   : > { %v3966_v35 = vmul.f32 %v3958_v47, %v3902_v46  ;;  %v5718_v38 = vld [vmem:[%s6574_s15 + $0x40] ss:$16 sps:$4 sm:$0xff] (!%p4923_p5)   ;;  %v5719_v46 = vld [vmem:[%s6574_s15 + $0x48] ss:$16 sps:$4 sm:$0xff] (!%p4923_p5)   ;;  %v5720_v47 = vld [vmem:[%s6574_s15 + $0x64] ss:$16 sps:$4 sm:$0xff] (!%p4923_p5)  }
0x132c   : > { %v3969_v44 = vpack.c.bf16 %v3965_v42, %v3963_v41  ;;  %v5722_v41 = vld [vmem:[%s6574_s15 + $0x6c] ss:$16 sps:$4 sm:$0xff] (!%p4923_p5)   ;;  %v5773_v42 = vmov (!%p4923_p5), 0  }
0x132d   : > { %v3970_v33 = vpack.c.bf16 %v3966_v35, %v3964_v28  ;;  %4348 = vmatpush1.bf16.msra.mxu0 (!%p4923_p5), %v5712_v53  ;;  %4401 = vmatpush1.bf16.msra.mxu1 (!%p4923_p5), %v5713_v17  ;;  %v5724_v28 = vld [vmem:[%s6574_s15 + $0x60] ss:$16 sps:$4 sm:$0xff] (!%p4923_p5)   ;;  %v5725_v35 = vld [vmem:[%s6574_s15 + $0x68] ss:$16 sps:$4 sm:$0xff] (!%p4923_p5)  }
0x132e   : > { %4349 = vmatprep.subr.bf16.mxu0 (!%p4923_p5), %v5714_v20  ;;  %4402 = vmatprep.subr.bf16.mxu1 (!%p4923_p5), %v5716_v23 }
0x132f   : > { %4146 = vmatprep.mubr.bf16.mxu0 %v3970_v33  ;;  %4430 = vmatprep.mubr.bf16.mxu1 (!%p4923_p5), %v5773_v42 }
0x1330   : > { %4147 = vmatmul.mubr.bf16.gmra.mrb[48].mxu0 %v3969_v44 }
0x1331   : > { %4377 = vmatprep.mubr.bf16.mxu0 (!%p4923_p5), %v5773_v42  ;;  %4350 = vmatpush1.bf16.msra.mxu0 (!%p4923_p5), %v5718_v38 }
0x1332   : > { %4403 = vmatpush1.bf16.msra.mxu1 (!%p4923_p5), %v5719_v46  ;;  %4351 = vmatprep.subr.bf16.mxu0 (!%p4923_p5), %v5720_v47 }
0x1333   : > { %4404 = vmatprep.subr.bf16.mxu1 (!%p4923_p5), %v5722_v41 }
0x1335   : > { %4352 = vmatpush1.bf16.msra.mxu0 (!%p4923_p5), %v5724_v28 }
0x1336   : > { %4405 = vmatpush1.bf16.msra.mxu1 (!%p4923_p5), %v5725_v35 }
0x13fb   : > { %v5117_v54 = vpop.f32.mrb[44].mxu0 }
0x13fc   : > { %v5118_v43 = vpop.f32.mrb[45].mxu0 }
0x13fd   : > { %v5119_v40 = vadd.f32 %v5118_v43, %v5117_v54  ;;  %v5120_v55 = vpop.f32.mrb[46].mxu0 }
0x13fe   : > { %v5121_v4 = vpop.f32.mrb[47].mxu0 }
0x13ff   : > { %v4141_v39 = vadd.f32 %v5119_v40, %v4906_v51  ;;  %v5122_v56 = vadd.f32 %v5121_v4, %v5120_v55 }
0x1401   : > { %v4155_v58 = vadd.f32 %v4141_v39, %v6301_v50  ;;  %v4144_v59 = vadd.f32 %v5122_v56, %v4906_v51 }
0x1403   : > { %4159 = vst.msk [vmem:[#allocation2] sm:$0xff] %vm713_vm1, %v4155_v58  ;;  %v4156_v60 = vadd.f32 %v4144_v59, %v6305_v31  ;;  %v5123_v61 = vpop.f32.mrb[48].mxu0  ;;  %v4169_v31 = vsel (!%p4923_p5), %vm713_vm1, %v4155_v58, 0.0 }
0x1404   : > { %v5124_v62 = vpop.f32.mrb[49].mxu0  ;;  %4170 = vadd.xlane.f32.xlu0 (!%p4923_p5), %v4169_v31 }
0x1405   : > { %4160 = vst.msk [vmem:[#allocation2 + $0x8] sm:$0xff] %vm713_vm1, %v4156_v60  ;;  %v5125_v63 = vadd.f32 %v5124_v62, %v5123_v61  ;;  %v5126_v48 = vpop.f32.mrb[50].mxu0  ;;  %v4172_v6 = vsel (!%p4923_p5), %vm713_vm1, %v4156_v60, 0.0  ;;  %v4924_v62 = vld [vmem:[%s6575_s18] ss:$0 sm:$0xff] (!%p4923_p5) }
0x1406   : > { %v5127_v0 = vpop.f32.mrb[51].mxu0 }
0x1407   : > { %v4149_v1 = vadd.f32 %v5125_v63, %v4906_v51  ;;  %v5128_v2 = vadd.f32 %v5127_v0, %v5126_v48  ;;  %4166 = sbr.rel (%p4923_p5) target bundleno = 5666 (0x1622), region = 92 }
0x1408   : > { %4173 = vadd.xlane.f32.xlu0 (!%p4923_p5), %v4172_v6 }
0x1409   : > { %v4157_v49 = vadd.f32 %v4149_v1, %v6303_v8  ;;  %v4152_v3 = vadd.f32 %v5128_v2, %v4906_v51  ;;  %v4925_v2 = vld [vmem:[%s6576_s23] ss:$0 sm:$0xff] (!%p4923_p5) }
0x140b   : > { %4161 = vst.msk [vmem:[#allocation2 + $0x10] sm:$0xff] %vm713_vm1, %v4157_v49  ;;  %v4158_v50 = vadd.f32 %v4152_v3, %v6309_v30  ;;  %v4175_v5 = vsel (!%p4923_p5), %vm713_vm1, %v4157_v49, 0.0 }
0x140c   : > { %4176 = vadd.xlane.f32.xlu1 (!%p4923_p5), %v4175_v5 }
0x140d   : > { %4162 = vst.msk [vmem:[#allocation2 + $0x18] sm:$0xff] %vm713_vm1, %v4158_v50  ;;  %v4178_v8 = vsel (!%p4923_p5), %vm713_vm1, %v4158_v50, 0.0 }
0x1410   : > { %4179 = vadd.xlane.f32.xlu1 %v4178_v8 }
0x1491   : > { %v4171_v7 = vpop.xlane.xlu0 %4170 }
0x1492   : > { %v4181_v30 = vmul.f32 0.015625, %v4171_v7 }
0x1494   : > { %v6424_v11 = vsub.f32 %v4155_v58, %v4181_v30 }
0x1495   : > { %v4174_v13 = vpop.xlane.xlu0 %4173 }
0x1496   : > { %v4182_v16 = vmul.f32 0.015625, %v4174_v13  ;;  %v4189_v19 = vmul.f32 %v6424_v11, %v6424_v11 }
0x1498   : > { %v6432_v22 = vsub.f32 %v4156_v60, %v4182_v16  ;;  %v4193_v24 = vsel %vm713_vm1, %v4189_v19, 0.0 }
0x1499   : > { %v4177_v9 = vpop.xlane.xlu1 %4176  ;;  %4194 = vadd.xlane.f32.xlu0 %v4193_v24 }
0x149a   : > { %v4183_v10 = vmul.f32 0.015625, %v4177_v9  ;;  %v4190_v26 = vmul.f32 %v6432_v22, %v6432_v22 }
0x149c   : > { %v6426_v12 = vsub.f32 %v4157_v49, %v4183_v10  ;;  %v4196_v57 = vsel %vm713_vm1, %v4190_v26, 0.0 }
0x149d   : > { %v4180_v14 = vpop.xlane.xlu1 %4179  ;;  %4197 = vadd.xlane.f32.xlu1 %v4196_v57 }
0x149e   : > { %v4184_v18 = vmul.f32 0.015625, %v4180_v14  ;;  %v4191_v21 = vmul.f32 %v6426_v12, %v6426_v12 }
0x14a0   : > { %v6434_v45 = vsub.f32 %v4158_v50, %v4184_v18  ;;  %v4199_v25 = vsel %vm713_vm1, %v4191_v21, 0.0 }
0x14a1   : > { %4200 = vadd.xlane.f32.xlu0 %v4199_v25 }
0x14a2   : > { %v4192_v27 = vmul.f32 %v6434_v45, %v6434_v45 }
0x14a4   : > { %v4202_v29 = vsel %vm713_vm1, %v4192_v27, 0.0 }
0x14a5   : > { %4203 = vadd.xlane.f32.xlu1 %v4202_v29 }
0x1526   : > { %v4195_v44 = vpop.xlane.xlu0 %4194 }
0x1527   : > { %v4205_v33 = vmul.f32 0.015625, %v4195_v44 }
0x1529   : > { %v4209_v54 = vadd.f32 1e-05, %v4205_v33 }
0x152a   : > { %v4198_v51 = vpop.xlane.xlu1 %4197 }
0x152b   : > { %5726 = vrsqrt.f32 %v4209_v54  ;;  %v4206_v40 = vmul.f32 0.015625, %v4198_v51 }
0x152d   : > { %v4210_v4 = vadd.f32 1e-05, %v4206_v40 }
0x152e   : > { %v4201_v43 = vpop.xlane.xlu0 %4200 }
0x152f   : > { %v4207_v55 = vmul.f32 0.015625, %v4201_v43  ;;  %5728 = vrsqrt.f32 %v4210_v4 }
0x1531   : > { %v4211_v39 = vadd.f32 1e-05, %v4207_v55 }
0x1532   : > { %v4204_v56 = vpop.xlane.xlu1 %4203 }
0x1533   : > { %v4208_v58 = vmul.f32 0.015625, %v4204_v56  ;;  %5730 = vrsqrt.f32 %v4211_v39 }
0x1535   : > { %v4212_v59 = vadd.f32 1e-05, %v4208_v58  ;;  %v5727_v60 = vpop.eup %5726 }
0x1536   : > { %v4217_v61 = vmul.f32 %v5727_v60, %v6424_v11 }
0x1537   : > { %5732 = vrsqrt.f32 %v4212_v59 }
0x1538   : > { %v4227_v0 = vmul.f32 %v4924_v62, %v4217_v61 }
0x1539   : > { %v5729_v63 = vpop.eup %5728 }
0x153a   : > { %v4218_v48 = vmul.f32 %v5729_v63, %v6432_v22  ;;  %v4237_v50 = vadd.f32 %v4925_v2, %v4227_v0 }
0x153c   : > { %v4228_v49 = vmul.f32 %v4924_v62, %v4218_v48 }
0x153d   : > { %v5731_v1 = vpop.eup %5730 }
0x153e   : > { %v4238_v31 = vadd.f32 %v4925_v2, %v4228_v49  ;;  %v4219_v5 = vmul.f32 %v5731_v1, %v6426_v12 }
0x1540   : > { %v4241_v8 = vpack.c.bf16 %v4238_v31, %v4237_v50  ;;  %v4229_v9 = vmul.f32 %v4924_v62, %v4219_v5 }
0x1541   : > { %v5733_v3 = vpop.eup %5732 }
0x1542   : > { %v4220_v6 = vmul.f32 %v5733_v3, %v6434_v45  ;;  %4942 = vmatmul.mubr.msk.bf16.vlgmr.msra.gmra.mrb[0].mxu0 %vm713_vm1, %v4241_v8  ;;  %4944 = vmatmul.mubr.msk.bf16.vlgmr.msra.gmra.mrb[0].mxu1 %vm713_vm1, %v4241_v8  ;;  %v4239_v10 = vadd.f32 %v4925_v2, %v4229_v9 }
0x1543   : > { %4387 = vmatprep.mubr.bf16.mxu0 %v5773_v42  ;;  %4440 = vmatprep.mubr.bf16.mxu1 %v5773_v42 }
0x1544   : > { %v4230_v7 = vmul.f32 %v4924_v62, %v4220_v6 }
0x1546   : > { %v4240_v30 = vadd.f32 %v4925_v2, %v4230_v7 }
0x1548   : > { %v4242_v11 = vpack.c.bf16 %v4240_v30, %v4239_v10 }
0x154a   : > { %4943 = vmatmul.mubr.msk.bf16.gmra.mrb[4].mxu0 %vm713_vm1, %v4242_v11  ;;  %4945 = vmatmul.mubr.msk.bf16.gmra.mrb[4].mxu1 %vm713_vm1, %v4242_v11 }
0x1615   : > { %v4379_v13 = vpop.f32.mrb[0].mxu0  ;;  %v4432_v12 = vpop.f32.mrb[0].mxu1 }
0x1616   : > { %4451 = vst [vmem:[#allocation3] sm:$0xff] %v4379_v13  ;;  %4453 = vst [vmem:[#allocation3 + $0x10] sm:$0xff] %v4432_v12  ;;  %v4381_v14 = vpop.f32.mrb[1].mxu0  ;;  %v4434_v16 = vpop.f32.mrb[1].mxu1 }
0x1617   : > { %4452 = vst [vmem:[#allocation3 + $0x8] sm:$0xff] %v4381_v14  ;;  %4454 = vst [vmem:[#allocation3 + $0x18] sm:$0xff] %v4434_v16  ;;  %v4383_v18 = vpop.f32.mrb[2].mxu0  ;;  %v4436_v19 = vpop.f32.mrb[2].mxu1 }
0x1618   : > { %4455 = vst [vmem:[#allocation3 + $0x20] sm:$0xff] %v4383_v18  ;;  %4457 = vst [vmem:[#allocation3 + $0x30] sm:$0xff] %v4436_v19  ;;  %v4385_v21 = vpop.f32.mrb[3].mxu0  ;;  %v4438_v22 = vpop.f32.mrb[3].mxu1 }
0x1619   : > { %4456 = vst [vmem:[#allocation3 + $0x28] sm:$0xff] %v4385_v21  ;;  %4458 = vst [vmem:[#allocation3 + $0x38] sm:$0xff] %v4438_v22 }
0x161d   : > { %v4389_v45 = vpop.f32.mrb[4].mxu0  ;;  %v4442_v24 = vpop.f32.mrb[4].mxu1 }
0x161e   : > { %4459 = vst [vmem:[#allocation3 + $0x40] sm:$0xff] %v4389_v45  ;;  %4461 = vst [vmem:[#allocation3 + $0x50] sm:$0xff] %v4442_v24  ;;  %v4391_v25 = vpop.f32.mrb[5].mxu0  ;;  %v4444_v26 = vpop.f32.mrb[5].mxu1 }
0x161f   : > { %4460 = vst [vmem:[#allocation3 + $0x48] sm:$0xff] %v4391_v25  ;;  %4462 = vst [vmem:[#allocation3 + $0x58] sm:$0xff] %v4444_v26  ;;  %v4393_v27 = vpop.f32.mrb[6].mxu0  ;;  %v4446_v57 = vpop.f32.mrb[6].mxu1 }
0x1620   : > { %4463 = vst [vmem:[#allocation3 + $0x60] sm:$0xff] %v4393_v27  ;;  %4465 = vst [vmem:[#allocation3 + $0x70] sm:$0xff] %v4446_v57  ;;  %v4395_v29 = vpop.f32.mrb[7].mxu0  ;;  %v4448_v32 = vpop.f32.mrb[7].mxu1 }
0x1621   : > { %4464 = vst [vmem:[#allocation3 + $0x68] sm:$0xff] %v4395_v29  ;;  %4466 = vst [vmem:[#allocation3 + $0x78] sm:$0xff] %v4448_v32 }
0x1622 PF: > { %p5507_p6 = scmp.eq.s32.totalorder %s5868_s22, 1  ;;  %s5774_s0 = smov [#allocation3]  }
0x1623   : > { %s4473_s19 = sshll.u32 %s5774_s0, 4  ;;  %s4474_s19 = int_to_ptr.vmem [resolvable:$true] %s4473_s19 }
0x1624   : > { %s5734_s24 = scalar_lea.vmem %s4474_s19, 2048  ;;  %p5741_p10 = scmp.lt.s32.totalorder %s4474_s19, %s4474_s19 }
0x1625   : > { %p5735_p7 = scmp.ne.s32.totalorder %s4474_s19, %s5734_s24  ;;  %p5742_p11 = scmp.lt.s32.totalorder %s5734_s24, %s5734_s24 }
0x1627   : > { %p5736_p8 = pnand %p5735_p7, %p5507_p6  ;;  %p5743_p12 = por %p5742_p11, %p5741_p10 }
0x1629   : > { %p5737_p9 = pneg %p5736_p8 }
0x162b   : > { %p5744_p13 = pnand %p5743_p12, %p5737_p9 }
0x162d   : > { %5747 = shalt.err (!%p5744_p13)
}
0x162e   : > { %s6577_s16 = sld [smem:[#allocation13_spill]] }
0x1634   : > { %s5748_s21 = scalar_lea.hbm %s6577_s16, 2048 }
0x1635   : > { %p5749_p0 = scmp.ne.s32.totalorder %s6577_s16, %s5748_s21  ;;  %p5754_p3 = scmp.lt.u32.totalorder %s5748_s21, %s6577_s16 }
0x1637   : > { %p5750_p1 = pnand %p5749_p0, %p5507_p6 }
0x1639   : > { %p5751_p2 = pneg %p5750_p1 }
0x163b   : > { %p5756_p4 = pnand %p5754_p3, %p5751_p2 }
0x163d   : > { %5759 = shalt.err (!%p5756_p4)
}
0x163e   : > { %s5775_s28 = smov 512   ;;  %s5776_s27 = smov 32  }
0x163f   : > { %5504 = dma.vmem_to_hbm [thread:$0]  (%p5507_p6), %s4474_s19, 2048, %s6577_s16, [#allocation4], %s5775_s28, %s5775_s28, %s5776_s27  }
0x1640   : > { %5765 = dma.done.wait (%p5507_p6), [#allocation4], 2048  }
0x1641   : > { %5767 = vsyncadd (%p5507_p6), [#allocation4], 4294965248 }
0x1642 PF: > { %s6578_s17 = sld [smem:[#allocation6_spill]] }
0x1648   : > { %s27_s21 = sadd.s32 1, %s6578_s17  }
0x1649   : > { %p24_p5 = scmp.ge.s32.totalorder %s27_s21, 4  }
0x164b   :  { %26 = sbr.rel (!%p24_p5) target bundleno = 9 (0x9), region = 177 }
0x1652   :  { %4489 = vsyncpa [#allocation4], 1 }
0x1653   :  { %4491 = vsyncpa [#allocation4 + $0x1], 1 }

</bundles_post_ra>
